<compile_context>
chip_gen: v6e
topology: v6e:2x2x1
jax: 0.10.0
libtpu: 0.0.40
codegen_flags: <defaults>
</compile_context>

<pallas_src>
import jax
import jax.numpy as jnp
from jax.experimental import pallas as pl
from jax.experimental.pallas import tpu as pltpu


def _round_up(v, m):
    return (v + m - 1) // m * m


def _nbytes(a):
    return int(a.size) * a.dtype.itemsize


def _vmem_limit(*nbytes):
    # Assume everything is double-buffered, add margin for f32 intermediates,
    # clamp to [32 MiB, 64 MiB] (>= default scoped limit everywhere,
    # <= v7x physical VMEM).
    need = 2 * int(sum(nbytes)) + (4 << 20)
    return int(min(64 << 20, max(32 << 20, need)))


def _pick_tile_n(N, tile_n):
    if tile_n is None:
        tile_n = min(256, _round_up(N, 8))
        # Give the 1-D "parallel" grid >= 2 steps when the batch allows so both
        # TensorCores can be used on v7x; cost is one extra ~0.35us grid step.
        if _round_up(N, tile_n) // tile_n < 2 and tile_n > 8:
            tile_n = max(8, _round_up((N + 1) // 2, 8))
    n_pad = _round_up(N, tile_n)
    return tile_n, n_pad


# ---------------------------------------------------------------------------
# AuxiliaryHeadImageNet
# ---------------------------------------------------------------------------
def _aux_head_kernel(x_ref, w1_ref, b1_ref, w2_ref, b2_ref, wc_ref, bc_ref, o_ref):
    """One batch tile of the auxiliary head.

    x_ref  : (tn, 7, 7, C) bf16 -- NHWC feature map tile (pre-ReLU)
    w1_ref : (C, 128)   bf16 -- conv1 weight * 1/25 (pool) * BN1 scale
    b1_ref : (1, 128)   f32  -- folded BN1 bias
    w2_ref : (4, 128, 768) bf16 -- 2x2 conv taps (k = kh*2+kw), * BN2 scale
    b2_ref : (1, 768)   f32  -- folded BN2 bias
    wc_ref : (768, Cpad) bf16 -- classifier weight, classes padded to 128 lanes
    bc_ref : (1, Cpad)  f32
    o_ref  : (tn, Cpad) f32
    """
    # ReLU commutes with the wrapper-side bf16 downcast.
    xr = jnp.maximum(x_ref[...], 0)                                   # (tn, 7, 7, C) bf16
    w1 = w1_ref[...]
    b1 = b1_ref[...]
    h2 = None
    # 4 pooled taps (kh, kw) of the 5x5/stride-2 AvgPool on the 7x7 map.
    for k, (h0, w0) in enumerate(((0, 0), (0, 2), (2, 0), (2, 2))):
        win = xr[:, h0:h0 + 5, w0:w0 + 5, :].astype(jnp.float32)      # (tn, 5, 5, C)
        tap = jnp.sum(win, axis=(1, 2))                               # (tn, C); 1/25 folded in w1
        h1k = jnp.dot(tap.astype(jnp.bfloat16), w1,
                      preferred_element_type=jnp.float32) + b1        # (tn, 128)
        h1k = jnp.maximum(h1k, 0.0).astype(jnp.bfloat16)
        # Consume the tap immediately: accumulate the 2x2-conv contribution.
        part = jnp.dot(h1k, w2_ref[k], preferred_element_type=jnp.float32)  # (tn, 768)
        h2 = part if h2 is None else h2 + part
    h2 = jnp.maximum(h2 + b2_ref[...], 0.0).astype(jnp.bfloat16)      # (tn, 768)
    # Linear(768, num_classes), lane-dense output (classes padded to 128).
    o_ref[...] = jnp.dot(h2, wc_ref[...], preferred_element_type=jnp.float32) + bc_ref[...]


def auxiliary_head_imagenet(x, params, *, tile_n=None):
    """x: (N, C, 7, 7) float32 NCHW feature map at the auxiliary tap point."""
    N, C, H, W = x.shape
    assert (H, W) == (7, 7), "auxiliary head is applied to the 7x7 feature map"
    w1p, b1p, w2p, b2p, wcp, bcp = (params[k] for k in ("w1", "b1", "w2", "b2", "wc", "bc"))
    cpad = wcp.shape[1]
    tile_n, n_pad = _pick_tile_n(N, tile_n)

    # Single relayout pass: NCHW -> NHWC, downcast to bf16, pad batch only.
    xh = jnp.transpose(x, (0, 2, 3, 1)).astype(jnp.bfloat16)
    xh = jnp.pad(xh, ((0, n_pad - N), (0, 0), (0, 0), (0, 0)))

    vmem_limit = _vmem_limit(
        tile_n * 49 * C * 2,        # bf16 input block
        tile_n * 49 * C * 4,        # f32 window intermediates (upper bound)
        tile_n * cpad * 4,          # f32 output block
        *(_nbytes(a) for a in (w1p, b1p, w2p, b2p, wcp, bcp)),
    )

    out = pl.pallas_call(
        _aux_head_kernel,
        out_shape=jax.ShapeDtypeStruct((n_pad, cpad), jnp.float32),
        grid=(n_pad // tile_n,),
        in_specs=[
            pl.BlockSpec((tile_n, 7, 7, C), lambda i: (i, 0, 0, 0)),
            pl.BlockSpec(w1p.shape, lambda i: (0, 0)),
            pl.BlockSpec(b1p.shape, lambda i: (0, 0)),
            pl.BlockSpec(w2p.shape, lambda i: (0, 0, 0)),
            pl.BlockSpec(b2p.shape, lambda i: (0, 0)),
            pl.BlockSpec(wcp.shape, lambda i: (0, 0)),
            pl.BlockSpec(bcp.shape, lambda i: (0, 0)),
        ],
        out_specs=pl.BlockSpec((tile_n, cpad), lambda i: (i, 0)),
        compiler_params=pltpu.CompilerParams(
            dimension_semantics=("parallel",),
            vmem_limit_bytes=vmem_limit),
    )(xh, w1p, b1p, w2p, b2p, wcp, bcp)
    return out[:N, :params["num_classes"]]


# ---------------------------------------------------------------------------
# NetworkImageNet main head: global AvgPool2d(7) (in-kernel, VPU) + Linear
# ---------------------------------------------------------------------------
def _pool_classifier_kernel(x_ref, w_ref, b_ref, o_ref):
    """x_ref: (tn, 49, C) bf16; w_ref: (C, Cpad) bf16; b_ref: (1, Cpad) f32."""
    pooled = jnp.sum(x_ref[...].astype(jnp.float32), axis=1) * (1.0 / 49.0)   # (tn, C)
    o_ref[...] = jnp.dot(pooled.astype(jnp.bfloat16), w_ref[...],
                         preferred_element_type=jnp.float32) + b_ref[...]


def global_pool_classifier(x, params, *, tile_n=None):
    """x: (N, C_prev, 7, 7) float32 NCHW (last cell output)."""
    N, C, H, W = x.shape
    assert (H, W) == (7, 7), "global_pooling is AvgPool2d(7) on a 7x7 map"
    wp, bp = params["w"], params["b"]
    cpad = wp.shape[1]
    tile_n, n_pad = _pick_tile_n(N, tile_n)

    # Single relayout pass: NCHW -> (N, 49, C) with channels on lanes, bf16.
    xf = jnp.transpose(x, (0, 2, 3, 1)).reshape(N, 49, C).astype(jnp.bfloat16)
    xf = jnp.pad(xf, ((0, n_pad - N), (0, 0), (0, 0)))

    vmem_limit = _vmem_limit(
        tile_n * 49 * C * 2,        # bf16 input block
        tile_n * 49 * C * 4,        # f32 pooling intermediate (upper bound)
        tile_n * cpad * 4,          # f32 output block
        _nbytes(wp), _nbytes(bp),
    )

    out = pl.pallas_call(
        _pool_classifier_kernel,
        out_shape=jax.ShapeDtypeStruct((n_pad, cpad), jnp.float32),
        grid=(n_pad // tile_n,),
        in_specs=[
            pl.BlockSpec((tile_n, 49, C), lambda i: (i, 0, 0)),
            pl.BlockSpec(wp.shape, lambda i: (0, 0)),
            pl.BlockSpec(bp.shape, lambda i: (0, 0)),
        ],
        out_specs=pl.BlockSpec((tile_n, cpad), lambda i: (i, 0)),
        compiler_params=pltpu.CompilerParams(
            dimension_semantics=("parallel",),
            vmem_limit_bytes=vmem_limit),
    )(xf, wp, bp)
    return out[:N, :params["num_classes"]]


# ---------------------------------------------------------------------------
# Deterministic synthetic parameters (kernel layout + raw copies for reference)
# ---------------------------------------------------------------------------
def make_params(key, C, C_prev, num_classes):
    ks = jax.random.split(key, 14)
    eps = 1e-5
    conv1_w = 0.1 * jax.random.normal(ks[0], (128, C), jnp.float32)       # Conv2d(C,128,1)
    g1 = 1.0 + 0.1 * jax.random.normal(ks[1], (128,), jnp.float32)
    be1 = 0.1 * jax.random.normal(ks[2], (128,), jnp.float32)
    rm1 = 0.1 * jax.random.normal(ks[3], (128,), jnp.float32)
    rv1 = 1.0 + 0.1 * jnp.abs(jax.random.normal(ks[4], (128,), jnp.float32))
    conv2_w = 0.05 * jax.random.normal(ks[5], (768, 128, 2, 2), jnp.float32)
    g2 = 1.0 + 0.1 * jax.random.normal(ks[6], (768,), jnp.float32)
    be2 = 0.1 * jax.random.normal(ks[7], (768,), jnp.float32)
    rm2 = 0.1 * jax.random.normal(ks[8], (768,), jnp.float32)
    rv2 = 1.0 + 0.1 * jnp.abs(jax.random.normal(ks[9], (768,), jnp.float32))
    fc_w = 0.05 * jax.random.normal(ks[10], (num_classes, 768), jnp.float32)
    fc_b = 0.1 * jax.random.normal(ks[11], (num_classes,), jnp.float32)
    cls_w = 0.05 * jax.random.normal(ks[12], (num_classes, C_prev), jnp.float32)
    cls_b = 0.1 * jax.random.normal(ks[13], (num_classes,), jnp.float32)

    # Fold inference-mode BatchNorm into per-channel scale / bias.
    s1 = g1 / jnp.sqrt(rv1 + eps)
    b1 = be1 - rm1 * s1
    s2 = g2 / jnp.sqrt(rv2 + eps)
    b2 = be2 - rm2 * s2

    cpad = _round_up(num_classes, 128)

    # --- aux head, kernel layout ---
    # Conv1x1 as (C, 128) with pool 1/25 and BN1 scale folded.
    w1 = (conv1_w.T * s1[None, :] * (1.0 / 25.0)).astype(jnp.bfloat16)
    # 2x2 conv as 4 tap matrices (k = kh*2 + kw), BN2 scale folded.
    w2 = jnp.transpose(conv2_w.reshape(768, 128, 4), (2, 1, 0))           # (4, 128, 768)
    w2 = (w2 * s2[None, None, :]).astype(jnp.bfloat16)
    wc = jnp.pad(fc_w.T, ((0, 0), (0, cpad - num_classes))).astype(jnp.bfloat16)
    bc = jnp.pad(fc_b, (0, cpad - num_classes)).reshape(1, cpad)
    aux_params = dict(w1=w1, b1=b1.reshape(1, 128), w2=w2, b2=b2.reshape(1, 768),
                      wc=wc, bc=bc, num_classes=num_classes)

    # --- main head: ORIGINAL classifier weight (pooling is done in-kernel) ---
    w_cls = jnp.pad(cls_w.T, ((0, 0), (0, cpad - num_classes))).astype(jnp.bfloat16)
    b_cls = jnp.pad(cls_b, (0, cpad - num_classes)).reshape(1, cpad)
    cls_params = dict(w=w_cls, b=b_cls, num_classes=num_classes)

    raw = dict(conv1_w=conv1_w, conv2_w=conv2_w, s1=s1, b1=b1, s2=s2, b2=b2,
               fc_w=fc_w, fc_b=fc_b, cls_w=cls_w, cls_b=cls_b)
    return aux_params, cls_params, raw


# ---------------------------------------------------------------------------
# Pure-JAX references mirroring the PyTorch forward (inference-mode BN)
# ---------------------------------------------------------------------------
def reference_aux(x, raw):
    h = jnp.maximum(x, 0.0)
    rows = []
    for h0 in (0, 2):
        cols = []
        for w0 in (0, 2):
            cols.append(jnp.mean(h[:, :, h0:h0 + 5, w0:w0 + 5], axis=(2, 3)))
        rows.append(jnp.stack(cols, axis=-1))
    p = jnp.stack(rows, axis=-2)                                    # (N, C, 2, 2)
    h1 = jnp.einsum("nchw,oc->nohw", p, raw["conv1_w"])             # (N, 128, 2, 2)
    h1 = h1 * raw["s1"][None, :, None, None] + raw["b1"][None, :, None, None]
    h1 = jnp.maximum(h1, 0.0)
    h2 = jnp.einsum("nchw,ochw->no", h1, raw["conv2_w"])            # (N, 768)
    h2 = jnp.maximum(h2 * raw["s2"][None, :] + raw["b2"][None, :], 0.0)
    return h2 @ raw["fc_w"].T + raw["fc_b"][None, :]


def reference_main(x, raw):
    p = jnp.mean(x, axis=(2, 3))                                    # AvgPool2d(7) + flatten
    return p @ raw["cls_w"].T + raw["cls_b"][None, :]


if __name__ == "__main__":
    key = jax.random.PRNGKey(0)
    kx1, kx2, kp = jax.random.split(key, 3)
    N, C_aux, C_prev, num_classes = 2, 32, 64, 10
    # Feature maps at the two head tap points of NetworkImageNet (7x7 spatial).
    x_aux = jax.random.normal(kx1, (N, C_aux, 7, 7), jnp.float32)
    s1_final = jax.random.normal(kx2, (N, C_prev, 7, 7), jnp.float32)
    aux_params, cls_params, raw = make_params(kp, C_aux, C_prev, num_classes)

    logits_aux = auxiliary_head_imagenet(x_aux, aux_params)
    logits = global_pool_classifier(s1_final, cls_params)
    jax.block_until_ready((logits, logits_aux))

    ref_aux = reference_aux(x_aux, raw)
    ref_main = reference_main(s1_final, raw)
    assert logits_aux.shape == (N, num_classes)
    assert logits.shape == (N, num_classes)
    ok_aux = bool(jnp.allclose(logits_aux, ref_aux, rtol=3e-2, atol=3e-2))
    ok_main = bool(jnp.allclose(logits, ref_main, rtol=3e-2, atol=3e-2))
    if not (ok_aux and ok_main):
        raise AssertionError("Pallas kernel output mismatches JAX reference "
                             f"(aux ok={ok_aux}, main ok={ok_main})")
    print("KERNEL_OK")
</pallas_src>

<mosaic_0001>
module attributes {stable_mosaic.version = 11 : i64} {
  func.func @_aux_head_kernel(%arg0: i32, %arg1: memref<8x7x7x32xbf16, #tpu.memory_space<vmem>>, %arg2: memref<32x128xbf16, #tpu.memory_space<vmem>>, %arg3: memref<1x128xf32, #tpu.memory_space<vmem>>, %arg4: memref<4x128x768xbf16, #tpu.memory_space<vmem>>, %arg5: memref<1x768xf32, #tpu.memory_space<vmem>>, %arg6: memref<768x128xbf16, #tpu.memory_space<vmem>>, %arg7: memref<1x128xf32, #tpu.memory_space<vmem>>, %arg8: memref<8x128xf32, #tpu.memory_space<vmem>>) attributes {dimension_semantics = [#tpu.dimension_semantics<parallel>], iteration_bounds = array<i64: 1>, scalar_prefetch = 0 : i64, scratch_operands = 0 : i64, tpu.core_type = #tpu.core_type<tc>, window_params = [{transform_indices = @transform_0, window_bounds = array<i64: 8, 7, 7, 32>}, {pipeline_mode = #tpu.pipeline_mode<synchronous>, transform_indices = @transform_1, window_bounds = array<i64: 32, 128>}, {pipeline_mode = #tpu.pipeline_mode<synchronous>, transform_indices = @transform_2, window_bounds = array<i64: 1, 128>}, {pipeline_mode = #tpu.pipeline_mode<synchronous>, transform_indices = @transform_3, window_bounds = array<i64: 4, 128, 768>}, {pipeline_mode = #tpu.pipeline_mode<synchronous>, transform_indices = @transform_4, window_bounds = array<i64: 1, 768>}, {pipeline_mode = #tpu.pipeline_mode<synchronous>, transform_indices = @transform_5, window_bounds = array<i64: 768, 128>}, {pipeline_mode = #tpu.pipeline_mode<synchronous>, transform_indices = @transform_6, window_bounds = array<i64: 1, 128>}, {transform_indices = @transform_7, window_bounds = array<i64: 8, 128>}]} {
    %c0 = arith.constant 0 : index
    %c0_0 = arith.constant 0 : index
    %c0_1 = arith.constant 0 : index
    %c0_2 = arith.constant 0 : index
    %0 = vector.load %arg1[%c0, %c0_0, %c0_1, %c0_2] : memref<8x7x7x32xbf16, #tpu.memory_space<vmem>>, vector<8x7x7x32xbf16>
    %cst = arith.constant 0.000000e+00 : bf16
    %1 = vector.broadcast %cst : bf16 to vector<8x7x7x32xbf16>
    %2 = arith.maximumf %0, %1 : vector<8x7x7x32xbf16>
    %c0_3 = arith.constant 0 : index
    %c0_4 = arith.constant 0 : index
    %3 = vector.load %arg2[%c0_3, %c0_4] : memref<32x128xbf16, #tpu.memory_space<vmem>>, vector<32x128xbf16>
    %c0_5 = arith.constant 0 : index
    %c0_6 = arith.constant 0 : index
    %4 = vector.load %arg3[%c0_5, %c0_6] : memref<1x128xf32, #tpu.memory_space<vmem>>, vector<1x128xf32>
    %5 = vector.extract_strided_slice %2 {offsets = [0, 0, 0, 0], sizes = [8, 5, 5, 32], strides = [1, 1, 1, 1]} : vector<8x7x7x32xbf16> to vector<8x5x5x32xbf16>
    %6 = arith.extf %5 : vector<8x5x5x32xbf16> to vector<8x5x5x32xf32>
    %cst_7 = arith.constant dense<0.000000e+00> : vector<8x32xf32>
    %7 = vector.multi_reduction <add>, %6, %cst_7 [1, 2] : vector<8x5x5x32xf32> to vector<8x32xf32>
    %8 = arith.truncf %7 : vector<8x32xf32> to vector<8x32xbf16>
    %cst_8 = arith.constant dense<0.000000e+00> : vector<8x128xf32>
    %9 = tpu.matmul %8, %3, %cst_8 {dimension_numbers = #tpu.dot_dimension_numbers<[1], [0], [0], [1], [0, 0, 1, 1], [], []>} : vector<8x32xbf16>, vector<32x128xbf16>, vector<8x128xf32> -> vector<8x128xf32>
    %10 = vector.broadcast %4 : vector<1x128xf32> to vector<8x128xf32>
    %11 = arith.addf %9, %10 : vector<8x128xf32>
    %cst_9 = arith.constant 0.000000e+00 : f32
    %12 = vector.broadcast %cst_9 : f32 to vector<8x128xf32>
    %13 = arith.maximumf %11, %12 : vector<8x128xf32>
    %14 = arith.truncf %13 : vector<8x128xf32> to vector<8x128xbf16>
    %c0_10 = arith.constant 0 : index
    %c0_11 = arith.constant 0 : index
    %c0_12 = arith.constant 0 : index
    %15 = vector.load %arg4[%c0_10, %c0_11, %c0_12] : memref<4x128x768xbf16, #tpu.memory_space<vmem>>, vector<1x128x768xbf16>
    %16 = vector.shape_cast %15 : vector<1x128x768xbf16> to vector<128x768xbf16>
    %cst_13 = arith.constant dense<0.000000e+00> : vector<8x768xf32>
    %17 = tpu.matmul %14, %16, %cst_13 {dimension_numbers = #tpu.dot_dimension_numbers<[1], [0], [0], [1], [0, 0, 1, 1], [], []>} : vector<8x128xbf16>, vector<128x768xbf16>, vector<8x768xf32> -> vector<8x768xf32>
    %18 = vector.extract_strided_slice %2 {offsets = [0, 0, 2, 0], sizes = [8, 5, 5, 32], strides = [1, 1, 1, 1]} : vector<8x7x7x32xbf16> to vector<8x5x5x32xbf16>
    %19 = arith.extf %18 : vector<8x5x5x32xbf16> to vector<8x5x5x32xf32>
    %cst_14 = arith.constant dense<0.000000e+00> : vector<8x32xf32>
    %20 = vector.multi_reduction <add>, %19, %cst_14 [1, 2] : vector<8x5x5x32xf32> to vector<8x32xf32>
    %21 = arith.truncf %20 : vector<8x32xf32> to vector<8x32xbf16>
    %cst_15 = arith.constant dense<0.000000e+00> : vector<8x128xf32>
    %22 = tpu.matmul %21, %3, %cst_15 {dimension_numbers = #tpu.dot_dimension_numbers<[1], [0], [0], [1], [0, 0, 1, 1], [], []>} : vector<8x32xbf16>, vector<32x128xbf16>, vector<8x128xf32> -> vector<8x128xf32>
    %23 = vector.broadcast %4 : vector<1x128xf32> to vector<8x128xf32>
    %24 = arith.addf %22, %23 : vector<8x128xf32>
    %cst_16 = arith.constant 0.000000e+00 : f32
    %25 = vector.broadcast %cst_16 : f32 to vector<8x128xf32>
    %26 = arith.maximumf %24, %25 : vector<8x128xf32>
    %27 = arith.truncf %26 : vector<8x128xf32> to vector<8x128xbf16>
    %c1 = arith.constant 1 : index
    %c0_17 = arith.constant 0 : index
    %c0_18 = arith.constant 0 : index
    %28 = vector.load %arg4[%c1, %c0_17, %c0_18] : memref<4x128x768xbf16, #tpu.memory_space<vmem>>, vector<1x128x768xbf16>
    %29 = vector.shape_cast %28 : vector<1x128x768xbf16> to vector<128x768xbf16>
    %cst_19 = arith.constant dense<0.000000e+00> : vector<8x768xf32>
    %30 = tpu.matmul %27, %29, %cst_19 {dimension_numbers = #tpu.dot_dimension_numbers<[1], [0], [0], [1], [0, 0, 1, 1], [], []>} : vector<8x128xbf16>, vector<128x768xbf16>, vector<8x768xf32> -> vector<8x768xf32>
    %31 = arith.addf %17, %30 : vector<8x768xf32>
    %32 = vector.extract_strided_slice %2 {offsets = [0, 2, 0, 0], sizes = [8, 5, 5, 32], strides = [1, 1, 1, 1]} : vector<8x7x7x32xbf16> to vector<8x5x5x32xbf16>
    %33 = arith.extf %32 : vector<8x5x5x32xbf16> to vector<8x5x5x32xf32>
    %cst_20 = arith.constant dense<0.000000e+00> : vector<8x32xf32>
    %34 = vector.multi_reduction <add>, %33, %cst_20 [1, 2] : vector<8x5x5x32xf32> to vector<8x32xf32>
    %35 = arith.truncf %34 : vector<8x32xf32> to vector<8x32xbf16>
    %cst_21 = arith.constant dense<0.000000e+00> : vector<8x128xf32>
    %36 = tpu.matmul %35, %3, %cst_21 {dimension_numbers = #tpu.dot_dimension_numbers<[1], [0], [0], [1], [0, 0, 1, 1], [], []>} : vector<8x32xbf16>, vector<32x128xbf16>, vector<8x128xf32> -> vector<8x128xf32>
    %37 = vector.broadcast %4 : vector<1x128xf32> to vector<8x128xf32>
    %38 = arith.addf %36, %37 : vector<8x128xf32>
    %cst_22 = arith.constant 0.000000e+00 : f32
    %39 = vector.broadcast %cst_22 : f32 to vector<8x128xf32>
    %40 = arith.maximumf %38, %39 : vector<8x128xf32>
    %41 = arith.truncf %40 : vector<8x128xf32> to vector<8x128xbf16>
    %c2 = arith.constant 2 : index
    %c0_23 = arith.constant 0 : index
    %c0_24 = arith.constant 0 : index
    %42 = vector.load %arg4[%c2, %c0_23, %c0_24] : memref<4x128x768xbf16, #tpu.memory_space<vmem>>, vector<1x128x768xbf16>
    %43 = vector.shape_cast %42 : vector<1x128x768xbf16> to vector<128x768xbf16>
    %cst_25 = arith.constant dense<0.000000e+00> : vector<8x768xf32>
    %44 = tpu.matmul %41, %43, %cst_25 {dimension_numbers = #tpu.dot_dimension_numbers<[1], [0], [0], [1], [0, 0, 1, 1], [], []>} : vector<8x128xbf16>, vector<128x768xbf16>, vector<8x768xf32> -> vector<8x768xf32>
    %45 = arith.addf %31, %44 : vector<8x768xf32>
    %46 = vector.extract_strided_slice %2 {offsets = [0, 2, 2, 0], sizes = [8, 5, 5, 32], strides = [1, 1, 1, 1]} : vector<8x7x7x32xbf16> to vector<8x5x5x32xbf16>
    %47 = arith.extf %46 : vector<8x5x5x32xbf16> to vector<8x5x5x32xf32>
    %cst_26 = arith.constant dense<0.000000e+00> : vector<8x32xf32>
    %48 = vector.multi_reduction <add>, %47, %cst_26 [1, 2] : vector<8x5x5x32xf32> to vector<8x32xf32>
    %49 = arith.truncf %48 : vector<8x32xf32> to vector<8x32xbf16>
    %cst_27 = arith.constant dense<0.000000e+00> : vector<8x128xf32>
    %50 = tpu.matmul %49, %3, %cst_27 {dimension_numbers = #tpu.dot_dimension_numbers<[1], [0], [0], [1], [0, 0, 1, 1], [], []>} : vector<8x32xbf16>, vector<32x128xbf16>, vector<8x128xf32> -> vector<8x128xf32>
    %51 = vector.broadcast %4 : vector<1x128xf32> to vector<8x128xf32>
    %52 = arith.addf %50, %51 : vector<8x128xf32>
    %cst_28 = arith.constant 0.000000e+00 : f32
    %53 = vector.broadcast %cst_28 : f32 to vector<8x128xf32>
    %54 = arith.maximumf %52, %53 : vector<8x128xf32>
    %55 = arith.truncf %54 : vector<8x128xf32> to vector<8x128xbf16>
    %c3 = arith.constant 3 : index
    %c0_29 = arith.constant 0 : index
    %c0_30 = arith.constant 0 : index
    %56 = vector.load %arg4[%c3, %c0_29, %c0_30] : memref<4x128x768xbf16, #tpu.memory_space<vmem>>, vector<1x128x768xbf16>
    %57 = vector.shape_cast %56 : vector<1x128x768xbf16> to vector<128x768xbf16>
    %cst_31 = arith.constant dense<0.000000e+00> : vector<8x768xf32>
    %58 = tpu.matmul %55, %57, %cst_31 {dimension_numbers = #tpu.dot_dimension_numbers<[1], [0], [0], [1], [0, 0, 1, 1], [], []>} : vector<8x128xbf16>, vector<128x768xbf16>, vector<8x768xf32> -> vector<8x768xf32>
    %59 = arith.addf %45, %58 : vector<8x768xf32>
    %c0_32 = arith.constant 0 : index
    %c0_33 = arith.constant 0 : index
    %60 = vector.load %arg5[%c0_32, %c0_33] : memref<1x768xf32, #tpu.memory_space<vmem>>, vector<1x768xf32>
    %61 = vector.broadcast %60 : vector<1x768xf32> to vector<8x768xf32>
    %62 = arith.addf %59, %61 : vector<8x768xf32>
    %cst_34 = arith.constant 0.000000e+00 : f32
    %63 = vector.broadcast %cst_34 : f32 to vector<8x768xf32>
    %64 = arith.maximumf %62, %63 : vector<8x768xf32>
    %65 = arith.truncf %64 : vector<8x768xf32> to vector<8x768xbf16>
    %c0_35 = arith.constant 0 : index
    %c0_36 = arith.constant 0 : index
    %66 = vector.load %arg6[%c0_35, %c0_36] : memref<768x128xbf16, #tpu.memory_space<vmem>>, vector<768x128xbf16>
    %cst_37 = arith.constant dense<0.000000e+00> : vector<8x128xf32>
    %67 = tpu.matmul %65, %66, %cst_37 {dimension_numbers = #tpu.dot_dimension_numbers<[1], [0], [0], [1], [0, 0, 1, 1], [], []>} : vector<8x768xbf16>, vector<768x128xbf16>, vector<8x128xf32> -> vector<8x128xf32>
    %c0_38 = arith.constant 0 : index
    %c0_39 = arith.constant 0 : index
    %68 = vector.load %arg7[%c0_38, %c0_39] : memref<1x128xf32, #tpu.memory_space<vmem>>, vector<1x128xf32>
    %69 = vector.broadcast %68 : vector<1x128xf32> to vector<8x128xf32>
    %70 = arith.addf %67, %69 : vector<8x128xf32>
    %c0_40 = arith.constant 0 : index
    %c0_41 = arith.constant 0 : index
    %71 = vector.load %arg8[%c0_40, %c0_41] : memref<8x128xf32, #tpu.memory_space<vmem>>, vector<8x128xf32>
    tpu.vector_store %arg8[%c0_40, %c0_41], %70 {strides = array<i32>} : memref<8x128xf32, #tpu.memory_space<vmem>>, vector<8x128xf32>,
    return
  }
  func.func @transform_0(%arg0: i32) -> (i32, i32, i32, i32) {
    %c0_i32 = arith.constant 0 : i32
    %c0_i32_0 = arith.constant 0 : i32
    %c0_i32_1 = arith.constant 0 : i32
    %c0_i32_2 = arith.constant 0 : i32
    return %arg0, %c0_i32, %c0_i32_0, %c0_i32_1 : i32, i32, i32, i32
  }
  func.func @transform_1(%arg0: i32) -> (i32, i32) {
    %c0_i32 = arith.constant 0 : i32
    %c0_i32_0 = arith.constant 0 : i32
    %c0_i32_1 = arith.constant 0 : i32
    return %c0_i32, %c0_i32_0 : i32, i32
  }
  func.func @transform_2(%arg0: i32) -> (i32, i32) {
    %c0_i32 = arith.constant 0 : i32
    %c0_i32_0 = arith.constant 0 : i32
    %c0_i32_1 = arith.constant 0 : i32
    return %c0_i32, %c0_i32_0 : i32, i32
  }
  func.func @transform_3(%arg0: i32) -> (i32, i32, i32) {
    %c0_i32 = arith.constant 0 : i32
    %c0_i32_0 = arith.constant 0 : i32
    %c0_i32_1 = arith.constant 0 : i32
    %c0_i32_2 = arith.constant 0 : i32
    return %c0_i32, %c0_i32_0, %c0_i32_1 : i32, i32, i32
  }
  func.func @transform_4(%arg0: i32) -> (i32, i32) {
    %c0_i32 = arith.constant 0 : i32
    %c0_i32_0 = arith.constant 0 : i32
    %c0_i32_1 = arith.constant 0 : i32
    return %c0_i32, %c0_i32_0 : i32, i32
  }
  func.func @transform_5(%arg0: i32) -> (i32, i32) {
    %c0_i32 = arith.constant 0 : i32
    %c0_i32_0 = arith.constant 0 : i32
    %c0_i32_1 = arith.constant 0 : i32
    return %c0_i32, %c0_i32_0 : i32, i32
  }
  func.func @transform_6(%arg0: i32) -> (i32, i32) {
    %c0_i32 = arith.constant 0 : i32
    %c0_i32_0 = arith.constant 0 : i32
    %c0_i32_1 = arith.constant 0 : i32
    return %c0_i32, %c0_i32_0 : i32, i32
  }
  func.func @transform_7(%arg0: i32) -> (i32, i32) {
    %c0_i32 = arith.constant 0 : i32
    %c0_i32_0 = arith.constant 0 : i32
    return %arg0, %c0_i32 : i32, i32
  }
}

</mosaic_0001>

<bundles_post_ra>
// kernel: tpu_custom_call.1
= control target key start
LH: loop header
LB: loop body
LE: loop exit
PB: predicated region body
PF: predicated region fallthrough
CT: control target
= control target key end

     0   :  { %12 = vsyncpa [#allocation3], 0  ;;  %s5587_s0 = inlined_call_operand.vmem [shape: bf16[8,7,7,32], index: 0, kind: input, shape index: {}]   ;;  %s5588_s1 = inlined_call_operand.vmem [shape: bf16[32,128], index: 1, kind: input, shape index: {}]   ;;  %s5589_s2 = inlined_call_operand.vmem [shape: f32[1,128], index: 2, kind: input, shape index: {}]   ;;  %s5590_s3 = inlined_call_operand.hbm [shape: bf16[4,128,768], index: 3, kind: input, shape index: {}]   ;;  %s5591_s4 = inlined_call_operand.vmem [shape: f32[1,768], index: 4, kind: input, shape index: {}]   ;;  %s5592_s5 = inlined_call_operand.vmem [shape: bf16[768,128], index: 5, kind: input, shape index: {}]   ;;  %s5593_s6 = inlined_call_operand.vmem [shape: f32[1,128], index: 6, kind: input, shape index: {}]   ;;  %s5594_s7 = inlined_call_operand.hbm [shape: f32[8,128], index: 7, kind: output, shape index: {}]  }
   0x1   :  { %13 = vsyncpa [#allocation4], 0  ;;  %s4135_s24 = smov [#allocation2]  }
   0x2   :  { %s25_s25 = sshll.u32 %s4135_s24, 4  ;;  %s26_s25 = int_to_ptr.vmem [resolvable:$true] %s25_s25 }
   0x3   :  { %s4099_s26 = scalar_lea.vmem %s26_s25, 24576  ;;  %p4104_p1 = scmp.lt.s32.totalorder %s26_s25, %s26_s25 }
   0x4   :  { %p4100_p0 = scmp.ne.s32.totalorder %s26_s25, %s4099_s26  ;;  %p4105_p2 = scmp.lt.s32.totalorder %s4099_s26, %s4099_s26 }
   0x6   :  { %p4106_p3 = por %p4105_p2, %p4104_p1 }
   0x8   :  { %p4107_p4 = pnand %p4106_p3, %p4100_p0 }
   0xa   :  { %4110 = shalt.err (!%p4107_p4)
}
   0xb   :  { %s4136_s27 = smov 384   ;;  %s4137_s28 = smov 24  }
   0xc   :  { %31 = dma.hbm_to_vmem [thread:$0]  %s5590_s3, 24576, %s26_s25, [#allocation3], %s4136_s27, %s4136_s27, %s4137_s28  }
   0xd   :  { %4131 = dma.done.wait [#allocation3], 24576  }
   0xe   :  { %4132 = vsyncadd [#allocation3], 4294942720  ;;  %v5595_v0 = vmov 0.0   ;;  %vm4139_vm0 = vmmov 0   ;;  %v5597_v1 = vmov 0   ;;  %v4192_v2 = vld [vmem:[%s5588_s1 + $0x8] sm:$0xff]  }
   0xf   :  { %3712 = vmatprep.subr.bf16.mxu0 %v5595_v0  ;;  %3716 = vmatprep.mubr.msk.bf16.mxu0 %vm4139_vm0, %v5595_v0  ;;  %5649 = vst [vmem:[#allocation8_spill] sm:$0xff] %v4192_v2  ;;  %v4197_v3 = vld [vmem:[%s5588_s1] sm:$0xff]   ;;  %v44_v6 = vld [vmem:[%s5587_s0 + $0x8] sm:$0xf]  ;;  %v45_v7 = vld [vmem:[%s5587_s0 + $0xc] sm:$0xf] }
  0x10   :  { %1150 = vmatprep.mubr.bf16.mxu1 %v5597_v1  ;;  %5650 = vst [vmem:[#allocation9_spill] sm:$0xff] %v4197_v3  ;;  %3713 = vmatpush3.bf16.msra.mxu0 %v4192_v2  ;;  %v42_v4 = vld [vmem:[%s5587_s0] sm:$0xf]  ;;  %v43_v5 = vld [vmem:[%s5587_s0 + $0x4] sm:$0xf]  ;;  %v4238_v16 = vmax.bf16 %v5597_v1, %v44_v6  ;;  %v4251_v20 = vmax.bf16 %v5597_v1, %v45_v7  ;;  %vm199_vm1 = vcmask 258048  }
  0x11   :  { %3714 = vmatprep.subr.bf16.mxu0 %v5595_v0  ;;  %v46_v8 = vld [vmem:[%s5587_s0 + $0x10] sm:$0xf]  ;;  %v4217_v9 = vmax.bf16 %v5597_v1, %v42_v4  ;;  %v49_v10 = vld [vmem:[%s5587_s0 + $0x1c] sm:$0xf]  ;;  %v50_v11 = vld [vmem:[%s5587_s0 + $0x20] sm:$0xf]  ;;  %v4229_v13 = vmax.bf16 %v5597_v1, %v43_v5 }
  0x12   :  { %v51_v12 = vld [vmem:[%s5587_s0 + $0x24] sm:$0xf]  ;;  %v52_v14 = vld [vmem:[%s5587_s0 + $0x28] sm:$0xf]  ;;  %v53_v15 = vld [vmem:[%s5587_s0 + $0x2c] sm:$0xf]  ;;  %v4254_v21 = vmax.bf16 %v5597_v1, %v46_v8  ;;  %v4257_v22 = vmax.bf16 %v5597_v1, %v49_v10  ;;  %v4266_v25 = vmax.bf16 %v5597_v1, %v50_v11  ;;  %v5603_v41 = vunpack.c.l.bf16 %v4238_v16 }
  0x13   :  { %v56_v17 = vld [vmem:[%s5587_s0 + $0x38] sm:$0xf]  ;;  %v57_v18 = vld [vmem:[%s5587_s0 + $0x3c] sm:$0xf]  ;;  %v58_v19 = vld [vmem:[%s5587_s0 + $0x40] sm:$0xf]  ;;  %v4269_v26 = vmax.bf16 %v5597_v1, %v51_v12  ;;  %v4272_v27 = vmax.bf16 %v5597_v1, %v52_v14  ;;  %v5599_v28 = vunpack.c.l.bf16 %v4217_v9  ;;  %v4286_v32 = vmax.bf16 %v5597_v1, %v53_v15 }
  0x14   :  { %3715 = vmatpush3.bf16.msra.mxu0 %v4197_v3  ;;  %v59_v23 = vld [vmem:[%s5587_s0 + $0x44] sm:$0xf]  ;;  %v60_v24 = vld [vmem:[%s5587_s0 + $0x48] sm:$0xf]  ;;  %v63_v29 = vld [vmem:[%s5587_s0 + $0x54] sm:$0xf]  ;;  %v4289_v33 = vmax.bf16 %v5597_v1, %v56_v17  ;;  %v4292_v34 = vmax.bf16 %v5597_v1, %v57_v18  ;;  %v5600_v35 = vunpack.c.l.bf16 %v4229_v13  ;;  %v4302_v38 = vmax.bf16 %v5597_v1, %v58_v19 }
  0x15   :  { %3720 = vmatprep.subr.bf16.mxu0 %v5595_v0  ;;  %v64_v30 = vld [vmem:[%s5587_s0 + $0x58] sm:$0xf]  ;;  %v65_v31 = vld [vmem:[%s5587_s0 + $0x5c] sm:$0xf]  ;;  %v66_v36 = vld [vmem:[%s5587_s0 + $0x60] sm:$0xf]  ;;  %v4305_v39 = vmax.bf16 %v5597_v1, %v59_v23  ;;  %v4308_v40 = vmax.bf16 %v5597_v1, %v60_v24  ;;  %v4321_v45 = vmax.bf16 %v5597_v1, %v63_v29  ;;  %v5601_v48 = vunpack.c.l.bf16 %v4251_v20 }
  0x16   :  { %v67_v37 = vld [vmem:[%s5587_s0 + $0x64] sm:$0xf]  ;;  %v70_v42 = vld [vmem:[%s5587_s0 + $0x70] sm:$0xf]  ;;  %v71_v43 = vld [vmem:[%s5587_s0 + $0x74] sm:$0xf]  ;;  %v4324_v46 = vmax.bf16 %v5597_v1, %v64_v30  ;;  %v4327_v47 = vmax.bf16 %v5597_v1, %v65_v31  ;;  %v4337_v51 = vmax.bf16 %v5597_v1, %v66_v36  ;;  %v5602_v53 = vunpack.c.l.bf16 %v4254_v21 }
  0x17   :  { %v72_v44 = vld [vmem:[%s5587_s0 + $0x78] sm:$0xf]  ;;  %v73_v49 = vld [vmem:[%s5587_s0 + $0x7c] sm:$0xf]  ;;  %v74_v50 = vld [vmem:[%s5587_s0 + $0x80] sm:$0xf]  ;;  %v4340_v52 = vmax.bf16 %v5597_v1, %v67_v37  ;;  %v5604_v54 = vunpack.c.l.bf16 %v4257_v22  ;;  %v4354_v58 = vmax.bf16 %v5597_v1, %v70_v42  ;;  %v4357_v59 = vmax.bf16 %v5597_v1, %v71_v43 }
  0x18   :  { %5651 = vst [vmem:[#allocation10_spill] sm:$0xff] %v4337_v51  ;;  %v77_v55 = vld [vmem:[%s5587_s0 + $0x8c] sm:$0xf]  ;;  %v78_v56 = vld [vmem:[%s5587_s0 + $0x90] sm:$0xf]  ;;  %v4360_v60 = vmax.bf16 %v5597_v1, %v72_v44  ;;  %v5605_v61 = vunpack.c.l.bf16 %v4266_v25  ;;  %v4370_v4 = vmax.bf16 %v5597_v1, %v73_v49  ;;  %v4373_v5 = vmax.bf16 %v5597_v1, %v74_v50  ;;  %s4141_s22 = smov [#allocation5]  }
  0x19   :  { %5652 = vst [vmem:[#allocation11_spill] sm:$0xff] %v4340_v52  ;;  %v79_v57 = vld [vmem:[%s5587_s0 + $0x94] sm:$0xf]  ;;  %5653 = vst [vmem:[#allocation12_spill] sm:$0xff] %v4357_v59  ;;  %v80_v62 = vld [vmem:[%s5587_s0 + $0x98] sm:$0xf]  ;;  %v4376_v6 = vmax.bf16 %v5597_v1, %v77_v55  ;;  %v5606_v7 = vunpack.c.l.bf16 %v4269_v26  ;;  %v4389_v12 = vmax.bf16 %v5597_v1, %v78_v56  ;;  %v5607_v17 = vunpack.c.l.bf16 %v4272_v27 }
  0x1a   :  { %5654 = vst [vmem:[#allocation13_spill] sm:$0xff] %v4360_v60  ;;  %v81_v63 = vld [vmem:[%s5587_s0 + $0x9c] sm:$0xf]  ;;  %5655 = vst [vmem:[#allocation14_spill] sm:$0xff] %v4370_v4  ;;  %v84_v8 = vld [vmem:[%s5587_s0 + $0xa8] sm:$0xf]  ;;  %v4392_v14 = vmax.bf16 %v5597_v1, %v79_v57  ;;  %v4395_v15 = vmax.bf16 %v5597_v1, %v80_v62  ;;  %v5608_v30 = vunpack.c.l.bf16 %v4286_v32  ;;  %v5683_v3 = vunpack.c.l.bf16 %v4324_v46 }
  0x1b   :  { %5656 = vst [vmem:[#allocation15_spill] sm:$0xff] %v4373_v5  ;;  %5657 = vst [vmem:[#allocation16_spill] sm:$0xff] %v4376_v6  ;;  %v85_v10 = vld [vmem:[%s5587_s0 + $0xac] sm:$0xf]  ;;  %v86_v11 = vld [vmem:[%s5587_s0 + $0xb0] sm:$0xf]  ;;  %v4405_v23 = vmax.bf16 %v5597_v1, %v81_v63  ;;  %v4408_v24 = vmax.bf16 %v5597_v1, %v84_v8  ;;  %v5684_v2 = vunpack.c.l.bf16 %v4327_v47 }
  0x1c   :  { %5658 = vst [vmem:[#allocation17_spill] sm:$0xff] %v4389_v12  ;;  %5659 = vst [vmem:[#allocation18_spill] sm:$0xff] %v4392_v14  ;;  %v87_v18 = vld [vmem:[%s5587_s0 + $0xb4] sm:$0xf]  ;;  %v88_v19 = vld [vmem:[%s5587_s0 + $0xb8] sm:$0xf]  ;;  %v4411_v29 = vmax.bf16 %v5597_v1, %v85_v10  ;;  %v4424_v42 = vmax.bf16 %v5597_v1, %v86_v11 }
  0x1d   :  { %5660 = vst [vmem:[#allocation19_spill] sm:$0xff] %v4395_v15  ;;  %5661 = vst [vmem:[#allocation20_spill] sm:$0xff] %v4405_v23  ;;  %v91_v31 = vld [vmem:[%s5587_s0 + $0xc4] sm:$0xf]  ;;  %v92_v36 = vld [vmem:[%s5587_s0 + $0xc8] sm:$0xf]  ;;  %v4427_v43 = vmax.bf16 %v5597_v1, %v87_v18  ;;  %v4430_v44 = vmax.bf16 %v5597_v1, %v88_v19  ;;  %v5682_v18 = vunpack.c.l.bf16 %v4321_v45 }
  0x1e   :  { %5662 = vst [vmem:[#allocation21_spill] sm:$0xff] %v4408_v24  ;;  %5663 = vst [vmem:[#allocation22_spill] sm:$0xff] %v4411_v29  ;;  %v93_v37 = vld [vmem:[%s5587_s0 + $0xcc] sm:$0xf]  ;;  %v94_v50 = vld [vmem:[%s5587_s0 + $0xd0] sm:$0xf]  ;;  %v4440_v56 = vmax.bf16 %v5597_v1, %v91_v31  ;;  %v4443_v57 = vmax.bf16 %v5597_v1, %v92_v36 }
  0x1f   :  { %5664 = vst [vmem:[#allocation23_spill] sm:$0xff] %v4424_v42  ;;  %5665 = vst [vmem:[#allocation24_spill] sm:$0xff] %v4427_v43  ;;  %v95_v55 = vld [vmem:[%s5587_s0 + $0xd4] sm:$0xf]  ;;  %v4446_v62 = vmax.bf16 %v5597_v1, %v93_v37  ;;  %v4450_v8 = vmax.bf16 %v5597_v1, %v94_v50  ;;  %v3758_v11 = vld [vmem:[#allocation2 + $0x2d8] ss:$24 sps:$4 sm:$0xff]  }
  0x20   :  { %5666 = vst [vmem:[#allocation25_spill] sm:$0xff] %v4430_v44  ;;  %5667 = vst [vmem:[#allocation26_spill] sm:$0xff] %v4440_v56  ;;  %v4453_v10 = vmax.bf16 %v5597_v1, %v95_v55  ;;  %v3756_v1 = vld [vmem:[#allocation2 + $0x2dc] ss:$24 sps:$4 sm:$0xff]   ;;  %v3762_v55 = vld [vmem:[#allocation2 + $0x2ac] ss:$24 sps:$4 sm:$0xff]  }
  0x21   :  { %5668 = vst [vmem:[#allocation27_spill] sm:$0xff] %v4443_v57  ;;  %5669 = vst [vmem:[#allocation28_spill] sm:$0xff] %v4446_v62  ;;  %1118 = vmatprep.subr.bf16.mxu1 %v3756_v1  ;;  %v3764_v36 = vld [vmem:[#allocation2 + $0x2a8] ss:$24 sps:$4 sm:$0xff]   ;;  %v200_v19 = vsel %vm199_vm1, %v5599_v28, 0.0  ;;  %v4492_v50 = vsel %vm199_vm1, %v5603_v41, 0.0  ;;  %v5677_v1 = vunpack.c.l.bf16 %v4292_v34 }
  0x22   :  { %5670 = vst [vmem:[#allocation29_spill] sm:$0xff] %v4450_v8  ;;  %5671 = vst [vmem:[#allocation30_spill] sm:$0xff] %v4453_v10  ;;  %1119 = vmatpush1.bf16.msra.mxu1 %v3758_v11  ;;  %v201_v11 = vsel %vm199_vm1, %v5600_v35, 0.0  ;;  %v3768_v37 = vld [vmem:[#allocation2 + $0x27c] ss:$24 sps:$4 sm:$0xff]   ;;  %v4502_v28 = vsel %vm199_vm1, %v5602_v53, 0.0 }
  0x23   :  { %1120 = vmatprep.subr.bf16.mxu1 %v3762_v55  ;;  %v202_v31 = vadd.f32 %v201_v11, %v200_v19  ;;  %5672 = vst [vmem:[#allocation31_spill] sm:$0xff] %v4492_v50  ;;  %v4497_v55 = vsel %vm199_vm1, %v5601_v48, 0.0  ;;  %5674 = vst [vmem:[#allocation33_spill] sm:$0xff] %v4502_v28  ;;  %v215_v35 = vsel %vm199_vm1, %v5604_v54, 0.0  ;;  %v216_v19 = vsel %vm199_vm1, %v5605_v61, 0.0  ;;  %s3377_s23 = sshll.u32 %s4141_s22, 4  ;;  %s3378_s23 = int_to_ptr.vmem [resolvable:$true] %s3377_s23 }
  0x24   :  { %5673 = vst [vmem:[#allocation32_spill] sm:$0xff] %v4497_v55  ;;  %v4513_v11 = vsel %vm199_vm1, %v5606_v7, 0.0  ;;  %v4518_v48 = vsel %vm199_vm1, %v5607_v17, 0.0  ;;  %v3770_v53 = vld [vmem:[#allocation2 + $0x278] ss:$24 sps:$4 sm:$0xff]   ;;  %v217_v49 = vadd.f32 %v216_v19, %v215_v35  ;;  %v4524_v54 = vsel %vm199_vm1, %v5608_v30, 0.0  ;;  %p4116_p6 = scmp.lt.s32.totalorder %s3378_s23, %s3378_s23 }
  0x25   :  { %5675 = vst [vmem:[#allocation34_spill] sm:$0xff] %v4513_v11  ;;  %v204_v41 = vadd.f32 %v4492_v50, %v202_v31  ;;  %v5676_v61 = vunpack.c.l.bf16 %v4289_v33  ;;  %v231_v17 = vsel %vm199_vm1, %v5677_v1, 0.0  ;;  %v5680_v35 = vunpack.c.l.bf16 %v4305_v39  ;;  %s4111_s24 = scalar_lea.vmem %s3378_s23, 128 }
  0x26   :  { %1121 = vmatpush1.bf16.msra.mxu1 %v3764_v36  ;;  %v5678_v36 = vunpack.c.l.bf16 %v4302_v38  ;;  %v5681_v19 = vunpack.c.l.bf16 %v4308_v40  ;;  %v219_v1 = vadd.f32 %v4513_v11, %v217_v49  ;;  %v4558_v50 = vsel %vm199_vm1, %v5684_v2, 0.0  ;;  %v3776_v49 = vld [vmem:[#allocation2 + $0x248] ss:$24 sps:$4 sm:$0xff]   ;;  %p4112_p5 = scmp.ne.s32.totalorder %s3378_s23, %s4111_s24  ;;  %p4117_p7 = scmp.lt.s32.totalorder %s4111_s24, %s4111_s24 }
  0x27   :  { %v230_v7 = vsel %vm199_vm1, %v5676_v61, 0.0  ;;  %1122 = vmatprep.subr.bf16.mxu1 %v3768_v37  ;;  %v4540_v31 = vsel %vm199_vm1, %v5680_v35, 0.0  ;;  %v3774_v61 = vld [vmem:[#allocation2 + $0x24c] ss:$24 sps:$4 sm:$0xff]   ;;  %v206_v37 = vadd.f32 %v4497_v55, %v204_v41  ;;  %v246_v35 = vsel %vm199_vm1, %v5683_v3, 0.0 }
  0x28   :  { %v4535_v63 = vsel %vm199_vm1, %v5678_v36, 0.0  ;;  %v4545_v30 = vsel %vm199_vm1, %v5681_v19, 0.0  ;;  %v232_v0 = vadd.f32 %v231_v17, %v230_v7  ;;  %v245_v36 = vsel %vm199_vm1, %v5682_v18, 0.0  ;;  %p4118_p8 = por %p4117_p7, %p4116_p6 }
  0x29   :  { %5679 = vst [vmem:[#allocation35_spill] sm:$0xff] %v4535_v63  ;;  %v5685_v19 = vunpack.c.l.bf16 %v4337_v51  ;;  %v5686_v7 = vunpack.c.l.bf16 %v4340_v52  ;;  %v208_v18 = vadd.f32 %v4502_v28, %v206_v37  ;;  %v221_v3 = vadd.f32 %v4518_v48, %v219_v1  ;;  %v3782_v28 = vld [vmem:[#allocation2 + $0x218] ss:$24 sps:$4 sm:$0xff]  }
  0x2a   :  { %1123 = vmatpush1.bf16.msra.mxu1 %v3770_v53  ;;  %v234_v11 = vadd.f32 %v4535_v63, %v232_v0  ;;  %v247_v2 = vadd.f32 %v246_v35, %v245_v36  ;;  %v5687_v55 = vunpack.c.l.bf16 %v4354_v58  ;;  %v5688_v51 = vunpack.c.l.bf16 %v4357_v59  ;;  %v3780_v0 = vld [vmem:[#allocation2 + $0x21c] ss:$24 sps:$4 sm:$0xff]   ;;  %p4119_p9 = pnand %p4118_p8, %p4112_p5 }
  0x2b   :  { %v4563_v41 = vsel %vm199_vm1, %v5685_v19, 0.0  ;;  %v4568_v17 = vsel %vm199_vm1, %v5686_v7, 0.0  ;;  %1124 = vmatprep.subr.bf16.mxu1 %v3774_v61  ;;  %v5689_v7 = vunpack.c.l.bf16 %v4360_v60  ;;  %v5690_v37 = vunpack.c.l.bf16 %v4370_v4 }
  0x2c   :  { %v260_v19 = vsel %vm199_vm1, %v5687_v55, 0.0  ;;  %v261_v52 = vsel %vm199_vm1, %v5688_v51, 0.0  ;;  %v209_v61 = vrot.slane %v208_v18, 4  ;;  %v223_v36 = vadd.f32 %v4524_v54, %v221_v3 }
  0x2d   :  { %v4582_v53 = vsel %vm199_vm1, %v5689_v7, 0.0  ;;  %v4587_v1 = vsel %vm199_vm1, %v5690_v37, 0.0  ;;  %v236_v55 = vadd.f32 %v4540_v31, %v234_v11  ;;  %v249_v35 = vadd.f32 %v4558_v50, %v247_v2 }
  0x2e   :  { %v262_v51 = vadd.f32 %v261_v52, %v260_v19  ;;  %v5691_v60 = vunpack.c.l.bf16 %v4373_v5  ;;  %v5693_v4 = vunpack.c.l.bf16 %v4376_v6  ;;  %v5694_v59 = vunpack.c.l.bf16 %v4389_v12  ;;  %1125 = vmatpush1.bf16.msra.mxu1 %v3776_v49 }
  0x2f   :  { %v210_v3 = vadd.f32 %v209_v61, %v208_v18  ;;  %v224_v11 = vrot.slane %v223_v36, 4  ;;  %v238_v2 = vadd.f32 %v4545_v30, %v236_v55  ;;  %v251_v52 = vadd.f32 %v4563_v41, %v249_v35  ;;  %1126 = vmatprep.subr.bf16.mxu1 %v3780_v0 }
  0x30   :  { %v4595_v7 = vsel %vm199_vm1, %v5691_v60, 0.0  ;;  %v275_v37 = vsel %vm199_vm1, %v5693_v4, 0.0  ;;  %v276_v63 = vsel %vm199_vm1, %v5694_v59, 0.0  ;;  %v264_v19 = vadd.f32 %v4582_v53, %v262_v51 }
  0x31   :  { %5692 = vst [vmem:[#allocation36_spill] sm:$0xff] %v4595_v7  ;;  %v277_v60 = vadd.f32 %v276_v63, %v275_v37  ;;  %v5695_v5 = vunpack.c.l.bf16 %v4392_v14  ;;  %v5696_v4 = vunpack.c.l.bf16 %v4395_v15  ;;  %v211_v49 = vrot.slane %v210_v3, 2 }
  0x32   :  { %v225_v18 = vadd.f32 %v224_v11, %v223_v36  ;;  %v239_v61 = vrot.slane %v238_v2, 4  ;;  %v253_v55 = vadd.f32 %v4568_v17, %v251_v52  ;;  %v266_v0 = vadd.f32 %v4587_v1, %v264_v19  ;;  %1127 = vmatpush1.bf16.msra.mxu1 %v3782_v28 }
  0x33   :  { %v4609_v6 = vsel %vm199_vm1, %v5695_v5, 0.0  ;;  %v4614_v59 = vsel %vm199_vm1, %v5696_v4, 0.0  ;;  %v5697_v63 = vunpack.c.l.bf16 %v4405_v23  ;;  %v5698_v5 = vunpack.c.l.bf16 %v4408_v24 }
  0x34   :  { %v279_v35 = vadd.f32 %v4609_v6, %v277_v60  ;;  %v212_v4 = vadd.f32 %v211_v49, %v210_v3  ;;  %v226_v15 = vrot.slane %v225_v18, 2  ;;  %v240_v36 = vadd.f32 %v239_v61, %v238_v2 }
  0x35   :  { %v4622_v51 = vsel %vm199_vm1, %v5697_v63, 0.0  ;;  %v290_v37 = vsel %vm199_vm1, %v5698_v5, 0.0  ;;  %v254_v11 = vrot.slane %v253_v55, 4  ;;  %v268_v52 = vadd.f32 %v4595_v7, %v266_v0 }
  0x36   :  { %v281_v19 = vadd.f32 %v4614_v59, %v279_v35  ;;  %v5699_v60 = vunpack.c.l.bf16 %v4411_v29  ;;  %v5700_v63 = vunpack.c.l.bf16 %v4424_v42  ;;  %v213_v24 = vrot.slane %v212_v4, 1 }
  0x37   :  { %v227_v5 = vadd.f32 %v226_v15, %v225_v18  ;;  %v241_v28 = vrot.slane %v240_v36, 2  ;;  %v255_v3 = vadd.f32 %v254_v11, %v253_v55  ;;  %v269_v49 = vrot.slane %v268_v52, 4 }
  0x38   :  { %v291_v23 = vsel %vm199_vm1, %v5699_v60, 0.0  ;;  %v4635_v14 = vsel %vm199_vm1, %v5700_v63, 0.0  ;;  %v283_v2 = vadd.f32 %v4622_v51, %v281_v19  ;;  %v5701_v0 = vunpack.c.l.bf16 %v4427_v43 }
  0x39   :  { %v292_v61 = vadd.f32 %v291_v23, %v290_v37  ;;  %v214_v29 = vadd.f32 %v213_v24, %v212_v4  ;;  %v228_v60 = vrot.slane %v227_v5, 1  ;;  %v242_v12 = vadd.f32 %v241_v28, %v240_v36 }
  0x3a   :  { %v4641_v35 = vsel %vm199_vm1, %v5701_v0, 0.0  ;;  %v256_v42 = vrot.slane %v255_v3, 2  ;;  %vm350_vm2 = vcmask 1041409   ;;  %v270_v63 = vadd.f32 %v269_v49, %v268_v52 }
  0x3b   :  { %v284_v7 = vrot.slane %v283_v2, 4  ;;  %v294_v15 = vadd.f32 %v4635_v14, %v292_v61  ;;  %v5702_v18 = vunpack.c.l.bf16 %v4430_v44  ;;  %v229_v23 = vadd.f32 %v228_v60, %v227_v5 }
  0x3c   :  { %v243_v37 = vrot.slane %v242_v12, 1  ;;  %v257_v11 = vadd.f32 %v256_v42, %v255_v3  ;;  %v5703_v19 = vunpack.c.l.bf16 %v4440_v56  ;;  %v271_v4 = vrot.slane %v270_v63, 2 }
  0x3d   :  { %v4647_v55 = vsel %vm199_vm1, %v5702_v18, 0.0  ;;  %v285_v36 = vadd.f32 %v284_v7, %v283_v2  ;;  %v296_v28 = vadd.f32 %v4641_v35, %v294_v15  ;;  %v5704_v52 = vunpack.c.l.bf16 %v4443_v57 }
  0x3e   :  { %v305_v24 = vsel %vm199_vm1, %v5703_v19, 0.0  ;;  %v244_v61 = vadd.f32 %v243_v37, %v242_v12  ;;  %v258_v0 = vrot.slane %v257_v11, 1  ;;  %v5705_v18 = vunpack.c.l.bf16 %v4446_v62 }
  0x3f   :  { %v306_v49 = vsel %vm199_vm1, %v5704_v52, 0.0  ;;  %v272_v42 = vadd.f32 %v271_v4, %v270_v63  ;;  %v286_v3 = vrot.slane %v285_v36, 2  ;;  %v298_v60 = vadd.f32 %v4647_v55, %v296_v28 }
  0x40   :  { %v307_v44 = vadd.f32 %v306_v49, %v305_v24  ;;  %v4659_v5 = vsel %vm199_vm1, %v5705_v18, 0.0  ;;  %v5706_v7 = vunpack.c.l.bf16 %v4450_v8  ;;  %v259_v15 = vadd.f32 %v258_v0, %v257_v11 }
  0x41   :  { %v5707_v12 = vunpack.c.l.bf16 %v4453_v10  ;;  %v320_v24 = vpack.c.bf16 %v214_v29, %v214_v29  ;;  %v273_v52 = vrot.slane %v272_v42, 1  ;;  %v287_v49 = vadd.f32 %v286_v3, %v285_v36 }
  0x42   :  { %v4665_v2 = vsel %vm199_vm1, %v5706_v7, 0.0  ;;  %v309_v19 = vadd.f32 %v4659_v5, %v307_v44  ;;  %v299_v63 = vrot.slane %v298_v60, 4  ;;  %v321_v4 = vpack.c.bf16 %v229_v23, %v229_v23 }
  0x43   :  { %v4671_v37 = vsel %vm199_vm1, %v5707_v12, 0.0  ;;  %v322_v18 = vpack.c.bf16 %v244_v61, %v244_v61  ;;  %v323_v8 = vpack.c.bf16 %v259_v15, %v259_v15  ;;  %v342_v62 = vunpack.c.l.b16 %v320_v24 }
  0x44   :  { %v311_v28 = vadd.f32 %v4665_v2, %v309_v19  ;;  %v274_v7 = vadd.f32 %v273_v52, %v272_v42  ;;  %v288_v57 = vrot.slane %v287_v49, 1  ;;  %v300_v11 = vadd.f32 %v299_v63, %v298_v60 }
  0x45   :  { %v343_v0 = vunpack.c.l.b16 %v321_v4  ;;  %v344_v10 = vunpack.c.l.b16 %v322_v18  ;;  %vm352_vm3 = vcmask 1042434   ;;  %v345_v23 = vunpack.c.l.b16 %v323_v8 }
  0x46   :  { %v313_v44 = vadd.f32 %v4671_v37, %v311_v28  ;;  %v289_v12 = vadd.f32 %v288_v57, %v287_v49  ;;  %v301_v56 = vrot.slane %v300_v11, 2  ;;  %v324_v29 = vpack.c.bf16 %v274_v7, %v274_v7 }
  0x47   :  { %v351_v36 = vsel %vm350_vm2, %v343_v0, %v342_v62  ;;  %vm354_vm4 = vcmask 1043459   ;;  %vm356_vm5 = vcmask 1044484   ;;  %vm358_vm6 = vcmask 1045509  }
  0x48   :  { %v314_v3 = vrot.slane %v313_v44, 4  ;;  %v302_v43 = vadd.f32 %v301_v56, %v300_v11  ;;  %v353_v61 = vsel %vm352_vm3, %v344_v10, %v351_v36  ;;  %v325_v42 = vpack.c.bf16 %v289_v12, %v289_v12 }
  0x49   :  { %v346_v60 = vunpack.c.l.b16 %v324_v29  ;;  %v355_v52 = vsel %vm354_vm4, %v345_v23, %v353_v61  ;;  %vm360_vm7 = vcmask 1046534   ;;  %vm362_vm8 = vcmask 1047559  }
  0x4a   :  { %v315_v15 = vadd.f32 %v314_v3, %v313_v44  ;;  %v303_v19 = vrot.slane %v302_v43, 1  ;;  %v347_v49 = vunpack.c.l.b16 %v325_v42  ;;  %vm377_vm9 = vcmask 261120  }
  0x4b   :  { %v357_v62 = vsel %vm356_vm5, %v346_v60, %v355_v52  ;;  %v5708_v18 = vunpack.c.l.bf16 %v4217_v9  ;;  %v5710_v44 = vunpack.c.l.bf16 %v4238_v16  ;;  %v5711_v29 = vunpack.c.l.bf16 %v4251_v20 }
  0x4c   :  { %v316_v24 = vrot.slane %v315_v15, 2  ;;  %v304_v63 = vadd.f32 %v303_v19, %v302_v43  ;;  %v359_v10 = vsel %vm358_vm6, %v347_v49, %v357_v62  ;;  %v5709_v43 = vunpack.c.l.bf16 %v4229_v13 }
  0x4d   :  { %v4682_v7 = vrot.slane %v5708_v18, 2  ;;  %v4690_v12 = vrot.slane %v5710_v44, 2  ;;  %v4694_v36 = vrot.slane %v5711_v29, 2  ;;  %v5712_v3 = vunpack.c.l.bf16 %v4254_v21  ;;  %v5726_v18 = vld [vmem:[#allocation10_spill] sm:$0xff]  ;;  %v5729_v44 = vld [vmem:[#allocation32_spill] sm:$0xff] }
  0x4e   :  { %v317_v57 = vadd.f32 %v316_v24, %v315_v15  ;;  %v326_v4 = vpack.c.bf16 %v304_v63, %v304_v63  ;;  %v4686_v11 = vrot.slane %v5709_v43, 2  ;;  %v5713_v61 = vunpack.c.l.bf16 %v4257_v22 }
  0x4f   :  { %v4698_v23 = vrot.slane %v5712_v3, 2  ;;  %v5714_v15 = vunpack.c.l.bf16 %v4266_v25  ;;  %v5715_v16 = vunpack.c.l.bf16 %v4269_v26  ;;  %v5716_v60 = vunpack.c.l.bf16 %v4272_v27  ;;  %v5730_v3 = vld [vmem:[#allocation11_spill] sm:$0xff] }
  0x50   :  { %v318_v8 = vrot.slane %v317_v57, 1  ;;  %v348_v56 = vunpack.c.l.b16 %v326_v4  ;;  %v4703_v13 = vrot.slane %v5713_v61, 2  ;;  %v5717_v24 = vunpack.c.l.bf16 %v4286_v32 }
  0x51   :  { %v4707_v42 = vrot.slane %v5714_v15, 2  ;;  %v4711_v19 = vrot.slane %v5715_v16, 2  ;;  %v4715_v21 = vrot.slane %v5716_v60, 2  ;;  %v5718_v22 = vunpack.c.l.bf16 %v4289_v33  ;;  %v5733_v15 = vld [vmem:[#allocation34_spill] sm:$0xff]  ;;  %v5734_v16 = vld [vmem:[#allocation35_spill] sm:$0xff]  ;;  %v5735_v60 = vld [vmem:[#allocation12_spill] sm:$0xff] }
  0x52   :  { %v319_v28 = vadd.f32 %v318_v8, %v317_v57  ;;  %v361_v9 = vsel %vm360_vm7, %v348_v56, %v359_v10  ;;  %v4719_v52 = vrot.slane %v5717_v24, 2  ;;  %v5719_v25 = vunpack.c.l.bf16 %v4292_v34 }
  0x53   :  { %v4723_v63 = vrot.slane %v5718_v22, 2  ;;  %v5720_v26 = vunpack.c.l.bf16 %v4302_v38  ;;  %v5721_v27 = vunpack.c.l.bf16 %v4305_v39  ;;  %v5722_v62 = vunpack.c.l.bf16 %v4308_v40  ;;  %v5728_v40 = vld [vmem:[#allocation31_spill] sm:$0xff] }
  0x54   :  { %v327_v0 = vpack.c.bf16 %v319_v28, %v319_v28  ;;  %v4727_v57 = vrot.slane %v5719_v25, 2  ;;  %v5723_v33 = vunpack.c.l.bf16 %v4321_v45  ;;  %v5724_v34 = vunpack.c.l.bf16 %v4324_v46  ;;  %v5737_v25 = vld [vmem:[#allocation33_spill] sm:$0xff] }
  0x55   :  { %v4731_v49 = vrot.slane %v5720_v26, 2  ;;  %v4735_v4 = vrot.slane %v5721_v27, 2  ;;  %v4740_v8 = vrot.slane %v5722_v62, 2  ;;  %v5725_v10 = vunpack.c.l.bf16 %v4327_v47 }
  0x56   :  { %v349_v20 = vunpack.c.l.b16 %v327_v0  ;;  %v4744_v56 = vrot.slane %v5723_v33, 2  ;;  %v4748_v28 = vrot.slane %v5724_v34, 2  ;;  %v5727_v43 = vunpack.c.l.bf16 %v5726_v18  ;;  %v5744_v18 = vld [vmem:[#allocation15_spill] sm:$0xff] }
  0x57   :  { %v4752_v39 = vrot.slane %v5725_v10, 2  ;;  %v1579_v29 = vadd.f32 %v5729_v44, %v5728_v40  ;;  %v5731_v45 = vunpack.c.l.bf16 %v5730_v3  ;;  %v5732_v46 = vunpack.c.l.bf16 %v4354_v58  ;;  %v5740_v10 = vld [vmem:[#allocation8_spill] sm:$0xff]  ;;  %v5749_v3 = vld [vmem:[#allocation17_spill] sm:$0xff] }
  0x58   :  { %v363_v32 = vsel %vm362_vm8, %v349_v20, %v361_v9  ;;  %v4756_v0 = vrot.slane %v5727_v43, 2  ;;  %v1591_v47 = vadd.f32 %v4518_v48, %v5733_v15  ;;  %v1603_v20 = vadd.f32 %v4540_v31, %v5734_v16  ;;  %v5738_v48 = vld [vmem:[#allocation13_spill] sm:$0xff]  ;;  %v5751_v16 = vld [vmem:[#allocation18_spill] sm:$0xff] }
  0x59   :  { %v364_v38 = vpack.c.b16 %v363_v32, %v363_v32  ;;  %v4762_v9 = vrot.slane %v5731_v45, 2  ;;  %v4766_v61 = vrot.slane %v5732_v46, 2  ;;  %v5736_v24 = vunpack.c.l.bf16 %v5735_v60  ;;  %v3755_v32 = vld [vmem:[#allocation2 + $0x2d4] ss:$24 sps:$4 sm:$0xff]   ;;  %v5753_v60 = vld [vmem:[#allocation19_spill] sm:$0xff] }
  0x5a   :  { %v4778_v26 = vadd.f32 %v1579_v29, %v5737_v25  ;;  %v1615_v58 = vadd.f32 %v4563_v41, %v4558_v50  ;;  %v1627_v27 = vadd.f32 %v4587_v1, %v4582_v53  ;;  %v5739_v62 = vunpack.c.l.bf16 %v5738_v48  ;;  %v5742_v41 = vld [vmem:[#allocation14_spill] sm:$0xff] }
  0x5b   :  { %3717 = vmatmul.mubr.msk.bf16.vlgmr.msra.gmra.mxu0 %vm377_vm9, %v364_v38  ;;  %v4775_v22 = vrot.slane %v5736_v24, 2  ;;  %v4789_v31 = vadd.f32 %v1591_v47, %v4524_v54  ;;  %v4792_v34 = vadd.f32 %v1603_v20, %v4545_v30  ;;  %v1639_v38 = vadd.f32 %v4614_v59, %v4609_v6  ;;  %v5746_v30 = vld [vmem:[#allocation36_spill] sm:$0xff] }
  0x5c   :  { %v4786_v33 = vrot.slane %v5739_v62, 2  ;;  %3721 = vmatpush3.bf16.msra.mxu0 %v5740_v10  ;;  %v5741_v50 = vmov 0.0   ;;  %v5743_v53 = vunpack.c.l.bf16 %v5742_v41  ;;  %v5745_v43 = vunpack.c.l.bf16 %v5744_v18  ;;  %v5747_v6 = vld [vmem:[#allocation16_spill] sm:$0xff] }
  0x5d   :  { %3724 = vmatprep.mubr.msk.bf16.mxu0 %vm4139_vm0, %v5741_v50  ;;  %v4806_v54 = vadd.f32 %v1615_v58, %v4568_v17  ;;  %v4809_v44 = vadd.f32 %v1627_v27, %v5746_v30  ;;  %3722 = vmatprep.subr.bf16.mxu0 %v5741_v50  ;;  %v5748_v59 = vunpack.c.l.bf16 %v5747_v6  ;;  %v5750_v45 = vunpack.c.l.bf16 %v5749_v3  ;;  %v5755_v58 = vld [vmem:[#allocation20_spill] sm:$0xff]  ;;  %v5763_v6 = vld [vmem:[#allocation9_spill] sm:$0xff] }
  0x5e   :  { %v534_v1 = vrot.slane %v5743_v53, 2  ;;  %v4803_v40 = vrot.slane %v5745_v43, 2  ;;  %v4817_v15 = vadd.f32 %v1639_v38, %v4622_v51  ;;  %v1651_v47 = vadd.f32 %v4641_v35, %v4635_v14  ;;  %v5757_v51 = vld [vmem:[#allocation21_spill] sm:$0xff]  ;;  %v5759_v14 = vld [vmem:[#allocation22_spill] sm:$0xff]  ;;  %v5761_v53 = vld [vmem:[#allocation23_spill] sm:$0xff] }
  0x5f   :  { %v536_v29 = vrot.slane %v5748_v59, 2  ;;  %v537_v46 = vrot.slane %v5750_v45, 2  ;;  %v5752_v17 = vunpack.c.l.bf16 %v5751_v16  ;;  %v5754_v24 = vunpack.c.l.bf16 %v5753_v60  ;;  %v5764_v59 = vld [vmem:[#allocation24_spill] sm:$0xff] }
  0x60   :  { %v5756_v27 = vunpack.c.l.bf16 %v5755_v58  ;;  %v1663_v62 = vadd.f32 %v4665_v2, %v4659_v5  ;;  %v5758_v38 = vunpack.c.l.bf16 %v5757_v51  ;;  %v5760_v35 = vunpack.c.l.bf16 %v5759_v14  ;;  %3723 = vmatpush3.bf16.msra.mxu0 %v5763_v6  ;;  %v5766_v2 = vld [vmem:[#allocation25_spill] sm:$0xff]  ;;  %v5772_v51 = vld [vmem:[#allocation28_spill] sm:$0xff]  ;;  %v5776_v6 = vld [vmem:[#allocation30_spill] sm:$0xff] }
  0x61   :  { %v4823_v20 = vrot.slane %v5752_v17, 2  ;;  %v4827_v25 = vrot.slane %v5754_v24, 2  ;;  %v5762_v18 = vunpack.c.l.bf16 %v5761_v53  ;;  %v4848_v30 = vadd.f32 %v1651_v47, %v4647_v55  ;;  %v5768_v17 = vld [vmem:[#allocation26_spill] sm:$0xff]  ;;  %1077 = vmatprep.subr.bf16.mxu0 %v3755_v32  ;;  %v5770_v55 = vld [vmem:[#allocation27_spill] sm:$0xff] }
  0x62   :  { %v4831_v48 = vrot.slane %v5756_v27, 2  ;;  %v4837_v10 = vrot.slane %v5758_v38, 2  ;;  %v4841_v41 = vrot.slane %v5760_v35, 2  ;;  %v5765_v3 = vunpack.c.l.bf16 %v5764_v59  ;;  %v5774_v35 = vld [vmem:[#allocation29_spill] sm:$0xff] }
  0x63   :  { %v4845_v43 = vrot.slane %v5762_v18, 2  ;;  %v5767_v45 = vunpack.c.l.bf16 %v5766_v2  ;;  %v5769_v60 = vunpack.c.l.bf16 %v5768_v17  ;;  %v4864_v58 = vadd.f32 %v1663_v62, %v4671_v37 }
  0x64   :  { %v4853_v5 = vrot.slane %v5765_v3, 2  ;;  %v5771_v47 = vunpack.c.l.bf16 %v5770_v55  ;;  %v5773_v38 = vunpack.c.l.bf16 %v5772_v51  ;;  %v5775_v53 = vunpack.c.l.bf16 %v5774_v35 }
  0x65   :  { %v4857_v16 = vrot.slane %v5767_v45, 2  ;;  %v4861_v24 = vrot.slane %v5769_v60, 2  ;;  %v5777_v59 = vunpack.c.l.bf16 %v5776_v6  ;;  %v591_v37 = vsel %vm199_vm1, %v4682_v7, 0.0 }
  0x66   :  { %v4868_v27 = vrot.slane %v5771_v47, 2  ;;  %v4872_v14 = vrot.slane %v5773_v38, 2  ;;  %v4876_v18 = vrot.slane %v5775_v53, 2  ;;  %v592_v32 = vsel %vm199_vm1, %v4686_v11, 0.0 }
  0x67   :  { %v4880_v3 = vrot.slane %v5777_v59, 2  ;;  %v593_v62 = vadd.f32 %v592_v32, %v591_v37  ;;  %v4888_v2 = vsel %vm199_vm1, %v4690_v12, 0.0  ;;  %v4892_v45 = vsel %vm199_vm1, %v4694_v36, 0.0 }
  0x68   :  { %v4896_v17 = vsel %vm199_vm1, %v4698_v23, 0.0  ;;  %v606_v60 = vsel %vm199_vm1, %v4703_v13, 0.0  ;;  %v607_v7 = vsel %vm199_vm1, %v4707_v42, 0.0  ;;  %v4904_v11 = vsel %vm199_vm1, %v4711_v19, 0.0 }
  0x69   :  { %v4908_v12 = vsel %vm199_vm1, %v4715_v21, 0.0  ;;  %v595_v36 = vadd.f32 %v4888_v2, %v593_v62  ;;  %v608_v55 = vadd.f32 %v607_v7, %v606_v60  ;;  %v4913_v23 = vsel %vm199_vm1, %v4719_v52, 0.0 }
  0x6a   :  { %v621_v13 = vsel %vm199_vm1, %v4723_v63, 0.0  ;;  %v622_v42 = vsel %vm199_vm1, %v4727_v57, 0.0  ;;  %v4921_v19 = vsel %vm199_vm1, %v4731_v49, 0.0  ;;  %v4925_v21 = vsel %vm199_vm1, %v4735_v4, 0.0 }
  0x6b   :  { %v4929_v47 = vsel %vm199_vm1, %v4740_v8, 0.0  ;;  %v597_v52 = vadd.f32 %v4892_v45, %v595_v36  ;;  %v610_v51 = vadd.f32 %v4904_v11, %v608_v55  ;;  %v623_v63 = vadd.f32 %v622_v42, %v621_v13 }
  0x6c   :  { %v636_v57 = vsel %vm199_vm1, %v4744_v56, 0.0  ;;  %v637_v49 = vsel %vm199_vm1, %v4748_v28, 0.0  ;;  %v4939_v38 = vsel %vm199_vm1, %v4752_v39, 0.0  ;;  %v4943_v4 = vsel %vm199_vm1, %v4756_v0, 0.0 }
  0x6d   :  { %v4947_v8 = vsel %vm199_vm1, %v4762_v9, 0.0  ;;  %v599_v35 = vadd.f32 %v4896_v17, %v597_v52  ;;  %v612_v53 = vadd.f32 %v4908_v12, %v610_v51  ;;  %v625_v56 = vadd.f32 %v4921_v19, %v623_v63 }
  0x6e   :  { %v638_v6 = vadd.f32 %v637_v49, %v636_v57  ;;  %v651_v28 = vsel %vm199_vm1, %v4766_v61, 0.0  ;;  %v652_v39 = vsel %vm199_vm1, %v4775_v22, 0.0  ;;  %v4958_v0 = vsel %vm199_vm1, %v4786_v33, 0.0 }
  0x6f   :  { %v4961_v9 = vsel %vm199_vm1, %v534_v1, 0.0  ;;  %v600_v59 = vrot.slane %v599_v35, 4  ;;  %v614_v37 = vadd.f32 %v4913_v23, %v612_v53  ;;  %v627_v32 = vadd.f32 %v4925_v21, %v625_v56 }
  0x70   :  { %v640_v62 = vadd.f32 %v4939_v38, %v638_v6  ;;  %v653_v60 = vadd.f32 %v652_v39, %v651_v28  ;;  %v4968_v61 = vsel %vm199_vm1, %v4803_v40, 0.0  ;;  %v666_v22 = vsel %vm199_vm1, %v536_v29, 0.0 }
  0x71   :  { %v667_v33 = vsel %vm199_vm1, %v537_v46, 0.0  ;;  %v601_v7 = vadd.f32 %v600_v59, %v599_v35  ;;  %v615_v36 = vrot.slane %v614_v37, 4  ;;  %v629_v1 = vadd.f32 %v4929_v47, %v627_v32 }
  0x72   :  { %v642_v55 = vadd.f32 %v4943_v4, %v640_v62  ;;  %v655_v13 = vadd.f32 %v4958_v0, %v653_v60  ;;  %v668_v42 = vadd.f32 %v667_v33, %v666_v22  ;;  %v4977_v52 = vsel %vm199_vm1, %v4823_v20, 0.0 }
  0x73   :  { %v4981_v40 = vsel %vm199_vm1, %v4827_v25, 0.0  ;;  %v602_v29 = vrot.slane %v601_v7, 2  ;;  %v616_v51 = vadd.f32 %v615_v36, %v614_v37  ;;  %v630_v46 = vrot.slane %v629_v1, 4 }
  0x74   :  { %v644_v63 = vadd.f32 %v4947_v8, %v642_v55  ;;  %v657_v57 = vadd.f32 %v4961_v9, %v655_v13  ;;  %v670_v49 = vadd.f32 %v4977_v52, %v668_v42  ;;  %v4988_v35 = vsel %vm199_vm1, %v4831_v48, 0.0 }
  0x75   :  { %v681_v20 = vsel %vm199_vm1, %v4837_v10, 0.0  ;;  %v603_v53 = vadd.f32 %v602_v29, %v601_v7  ;;  %v617_v56 = vrot.slane %v616_v51, 2  ;;  %v631_v25 = vadd.f32 %v630_v46, %v629_v1 }
  0x76   :  { %v645_v6 = vrot.slane %v644_v63, 4  ;;  %v659_v28 = vadd.f32 %v4968_v61, %v657_v57  ;;  %v672_v39 = vadd.f32 %v4981_v40, %v670_v49  ;;  %v682_v59 = vsel %vm199_vm1, %v4841_v41, 0.0 }
  0x77   :  { %v4998_v37 = vsel %vm199_vm1, %v4845_v43, 0.0  ;;  %v604_v48 = vrot.slane %v603_v53, 1  ;;  %v618_v32 = vadd.f32 %v617_v56, %v616_v51  ;;  %v632_v62 = vrot.slane %v631_v25, 2 }
  0x78   :  { %v646_v60 = vadd.f32 %v645_v6, %v644_v63  ;;  %v660_v10 = vrot.slane %v659_v28, 4  ;;  %v674_v22 = vadd.f32 %v4988_v35, %v672_v39  ;;  %v683_v33 = vadd.f32 %v682_v59, %v681_v20 }
  0x79   :  { %v5003_v7 = vsel %vm199_vm1, %v4853_v5, 0.0  ;;  %v605_v36 = vadd.f32 %v604_v48, %v603_v53  ;;  %v619_v1 = vrot.slane %v618_v32, 1  ;;  %v633_v55 = vadd.f32 %v632_v62, %v631_v25 }
  0x7a   :  { %v647_v41 = vrot.slane %v646_v60, 2  ;;  %v661_v13 = vadd.f32 %v660_v10, %v659_v28  ;;  %v675_v42 = vrot.slane %v674_v22, 4  ;;  %v685_v43 = vadd.f32 %v4998_v37, %v683_v33 }
  0x7b   :  { %v5008_v29 = vsel %vm199_vm1, %v4857_v16, 0.0  ;;  %v620_v51 = vadd.f32 %v619_v1, %v618_v32  ;;  %v634_v46 = vrot.slane %v633_v55, 1  ;;  %v696_v57 = vsel %vm199_vm1, %v4861_v24, 0.0 }
  0x7c   :  { %v648_v63 = vadd.f32 %v647_v41, %v646_v60  ;;  %v662_v5 = vrot.slane %v661_v13, 2  ;;  %v676_v49 = vadd.f32 %v675_v42, %v674_v22  ;;  %v687_v20 = vadd.f32 %v5003_v7, %v685_v43 }
  0x7d   :  { %v697_v53 = vsel %vm199_vm1, %v4868_v27, 0.0  ;;  %v635_v56 = vadd.f32 %v634_v46, %v633_v55  ;;  %v699_v16 = vsel %vm199_vm1, %v4872_v14, 0.0  ;;  %v701_v24 = vsel %vm199_vm1, %v4876_v18, 0.0 }
  0x7e   :  { %v649_v25 = vrot.slane %v648_v63, 1  ;;  %v698_v6 = vadd.f32 %v697_v53, %v696_v57  ;;  %v663_v28 = vadd.f32 %v662_v5, %v661_v13  ;;  %v677_v39 = vrot.slane %v676_v49, 2 }
  0x7f   :  { %v689_v59 = vadd.f32 %v5008_v29, %v687_v20  ;;  %v703_v62 = vsel %vm199_vm1, %v4880_v3, 0.0  ;;  %v711_v60 = vpack.c.bf16 %v605_v36, %v605_v36  ;;  %v712_v33 = vpack.c.bf16 %v620_v51, %v620_v51 }
  0x80   :  { %v650_v48 = vadd.f32 %v649_v25, %v648_v63  ;;  %v700_v32 = vadd.f32 %v699_v16, %v698_v6  ;;  %v664_v27 = vrot.slane %v663_v28, 1  ;;  %v678_v10 = vadd.f32 %v677_v39, %v676_v49 }
  0x81   :  { %v690_v22 = vrot.slane %v689_v59, 4  ;;  %v713_v55 = vpack.c.bf16 %v635_v56, %v635_v56  ;;  %v727_v41 = vunpack.c.l.b16 %v711_v60  ;;  %v728_v46 = vunpack.c.l.b16 %v712_v33 }
  0x82   :  { %v702_v1 = vadd.f32 %v701_v24, %v700_v32  ;;  %v714_v14 = vpack.c.bf16 %v650_v48, %v650_v48  ;;  %v665_v13 = vadd.f32 %v664_v27, %v663_v28  ;;  %v679_v42 = vrot.slane %v678_v10, 1 }
  0x83   :  { %v691_v43 = vadd.f32 %v690_v22, %v689_v59  ;;  %v729_v18 = vunpack.c.l.b16 %v713_v55  ;;  %v2218_v5 = vadd.f32 %v4892_v45, %v4888_v2  ;;  %v735_v49 = vsel %vm350_vm2, %v728_v46, %v727_v41  ;;  %v3779_v46 = vld [vmem:[#allocation2 + $0x214] ss:$24 sps:$4 sm:$0xff]  }
  0x84   :  { %v704_v57 = vadd.f32 %v703_v62, %v702_v1  ;;  %v730_v63 = vunpack.c.l.b16 %v714_v14  ;;  %v680_v3 = vadd.f32 %v679_v42, %v678_v10  ;;  %v715_v20 = vpack.c.bf16 %v665_v13, %v665_v13  ;;  %v3761_v14 = vld [vmem:[#allocation2 + $0x2a4] ss:$24 sps:$4 sm:$0xff]   ;;  %v3765_v13 = vld [vmem:[#allocation2 + $0x270] ss:$24 sps:$4 sm:$0xff]  }
  0x85   :  { %v692_v36 = vrot.slane %v691_v43, 2  ;;  %v736_v53 = vsel %vm352_vm3, %v729_v18, %v735_v49  ;;  %v5027_v56 = vadd.f32 %v2218_v5, %v4896_v17  ;;  %v2230_v25 = vadd.f32 %v4908_v12, %v4904_v11  ;;  %v3773_v42 = vld [vmem:[#allocation2 + $0x244] ss:$24 sps:$4 sm:$0xff]   ;;  %v3788_v18 = vld [vmem:[#allocation2 + $0x1e8] ss:$24 sps:$4 sm:$0xff]  }
  0x86   :  { %v705_v51 = vrot.slane %v704_v57, 4  ;;  %v716_v28 = vpack.c.bf16 %v680_v3, %v680_v3  ;;  %v2242_v2 = vadd.f32 %v4925_v21, %v4921_v19  ;;  %v2254_v45 = vadd.f32 %v4943_v4, %v4939_v38  ;;  %v3792_v5 = vld [vmem:[#allocation2 + $0x1bc] ss:$24 sps:$4 sm:$0xff]  }
  0x87   :  { %v693_v6 = vadd.f32 %v692_v36, %v691_v43  ;;  %v5032_v59 = vadd.f32 %v2230_v25, %v4913_v23  ;;  %v731_v32 = vunpack.c.l.b16 %v715_v20  ;;  %v737_v17 = vsel %vm354_vm4, %v730_v63, %v736_v53  ;;  %v3771_v43 = vld [vmem:[#allocation2 + $0x240] ss:$24 sps:$4 sm:$0xff]   ;;  %v3777_v63 = vld [vmem:[#allocation2 + $0x210] ss:$24 sps:$4 sm:$0xff]   ;;  %v3785_v3 = vld [vmem:[#allocation2 + $0x1e4] ss:$24 sps:$4 sm:$0xff]  }
  0x88   :  { %v706_v39 = vadd.f32 %v705_v51, %v704_v57  ;;  %v2266_v60 = vadd.f32 %v4961_v9, %v4958_v0  ;;  %v5042_v12 = vadd.f32 %v2242_v2, %v4929_v47  ;;  %v5045_v23 = vadd.f32 %v2254_v45, %v4947_v8  ;;  %v3786_v57 = vld [vmem:[#allocation2 + $0x1ec] ss:$24 sps:$4 sm:$0xff]   ;;  %v3794_v36 = vld [vmem:[#allocation2 + $0x1b8] ss:$24 sps:$4 sm:$0xff]   ;;  %v47_v45 = vld [vmem:[%s5587_s0 + $0x14] sm:$0xf] }
  0x89   :  { %v694_v48 = vrot.slane %v693_v6, 1  ;;  %v2278_v19 = vadd.f32 %v4981_v40, %v4977_v52  ;;  %v2290_v4 = vadd.f32 %v5003_v7, %v4998_v37  ;;  %v732_v10 = vunpack.c.l.b16 %v716_v28  ;;  %1128 = vmatprep.subr.bf16.mxu1 %v3786_v57  ;;  %v3783_v20 = vld [vmem:[#allocation2 + $0x1e0] ss:$24 sps:$4 sm:$0xff]   ;;  %v3791_v49 = vld [vmem:[#allocation2 + $0x1b4] ss:$24 sps:$4 sm:$0xff]  }
  0x8a   :  { %v707_v11 = vrot.slane %v706_v39, 2  ;;  %v5050_v38 = vadd.f32 %v2266_v60, %v4968_v61  ;;  %v2302_v47 = vadd.f32 %v701_v24, %v699_v16  ;;  %v738_v8 = vsel %vm356_vm5, %v731_v32, %v737_v17  ;;  %1129 = vmatpush1.bf16.msra.mxu1 %v3788_v18  ;;  %v3789_v51 = vld [vmem:[#allocation2 + $0x1b0] ss:$24 sps:$4 sm:$0xff]   ;;  %v3797_v53 = vld [vmem:[#allocation2 + $0x184] ss:$24 sps:$4 sm:$0xff]  }
  0x8b   :  { %v695_v21 = vadd.f32 %v694_v48, %v693_v6  ;;  %v5055_v0 = vadd.f32 %v2278_v19, %v4988_v35  ;;  %v5059_v22 = vadd.f32 %v2290_v4, %v5008_v29  ;;  %v739_v1 = vsel %vm358_vm6, %v732_v10, %v738_v8  ;;  %v3753_v35 = vld [vmem:[#allocation2 + $0x2d0] ss:$24 sps:$4 sm:$0xff]   ;;  %v3759_v29 = vld [vmem:[#allocation2 + $0x2a0] ss:$24 sps:$4 sm:$0xff]   ;;  %1130 = vmatprep.subr.bf16.mxu1 %v3792_v5  ;;  %v3798_v25 = vld [vmem:[#allocation2 + $0x18c] ss:$24 sps:$4 sm:$0xff]  }
  0x8c   :  { %v708_v27 = vadd.f32 %v707_v11, %v706_v39  ;;  %v5061_v40 = vadd.f32 %v2302_v47, %v703_v62  ;;  %v5778_v41 = vmov 0   ;;  %v3767_v62 = vld [vmem:[#allocation2 + $0x274] ss:$24 sps:$4 sm:$0xff]   ;;  %v3795_v6 = vld [vmem:[#allocation2 + $0x180] ss:$24 sps:$4 sm:$0xff]  }
  0x8d   :  { %v717_v9 = vpack.c.bf16 %v695_v21, %v695_v21  ;;  %v3800_v28 = vld [vmem:[#allocation2 + $0x188] ss:$24 sps:$4 sm:$0xff]   ;;  %v3803_v39 = vld [vmem:[#allocation2 + $0x2e4] ss:$24 sps:$4 sm:$0xff]   ;;  %v3806_v2 = vld [vmem:[#allocation2 + $0x154] ss:$24 sps:$4 sm:$0xff]   ;;  %v5087_v19 = vmax.bf16 %v5778_v41, %v47_v45 }
  0x8e   :  { %v709_v52 = vrot.slane %v708_v27, 1  ;;  %1131 = vmatpush1.bf16.msra.mxu1 %v3794_v36  ;;  %v54_v48 = vld [vmem:[%s5587_s0 + $0x30] sm:$0xf]  ;;  %v61_v32 = vld [vmem:[%s5587_s0 + $0x4c] sm:$0xf] }
  0x8f   :  { %v733_v61 = vunpack.c.l.b16 %v717_v9  ;;  %1132 = vmatprep.subr.bf16.mxu1 %v3798_v25  ;;  %v68_v17 = vld [vmem:[%s5587_s0 + $0x68] sm:$0xf]  ;;  %v75_v60 = vld [vmem:[%s5587_s0 + $0x84] sm:$0xf]  ;;  %v82_v11 = vld [vmem:[%s5587_s0 + $0xa0] sm:$0xf]  ;;  %v5093_v4 = vmax.bf16 %v5778_v41, %v54_v48 }
  0x90   :  { %v710_v33 = vadd.f32 %v709_v52, %v708_v27  ;;  %v89_v21 = vld [vmem:[%s5587_s0 + $0xbc] sm:$0xf]  ;;  %v5096_v27 = vmax.bf16 %v5778_v41, %v61_v32  ;;  %v5099_v10 = vmax.bf16 %v5778_v41, %v68_v17  ;;  %v5102_v47 = vmax.bf16 %v5778_v41, %v75_v60  ;;  %v96_v8 = vld [vmem:[%s5587_s0 + $0xd8] sm:$0xf]  ;;  %v55_v18 = vld [vmem:[%s5587_s0 + $0x34] sm:$0xf] }
  0x91   :  { %v740_v7 = vsel %vm360_vm7, %v733_v61, %v739_v1  ;;  %v5105_v9 = vmax.bf16 %v5778_v41, %v82_v11  ;;  %v5111_v52 = vmax.bf16 %v5778_v41, %v89_v21  ;;  %v1563_v61 = vunpack.c.l.bf16 %v5087_v19  ;;  %v48_v57 = vld [vmem:[%s5587_s0 + $0x18] sm:$0xf]  ;;  %v90_v48 = vld [vmem:[%s5587_s0 + $0xc0] sm:$0xf]  ;;  %v97_v11 = vld [vmem:[%s5587_s0 + $0xdc] sm:$0xf] }
  0x92   :  { %v718_v37 = vpack.c.bf16 %v710_v33, %v710_v33  ;;  %1133 = vmatpush1.bf16.msra.mxu1 %v3800_v28  ;;  %v1565_v33 = vunpack.c.l.bf16 %v5093_v4  ;;  %v1567_v1 = vunpack.c.l.bf16 %v5096_v27  ;;  %v5160_v36 = vmax.bf16 %v5778_v41, %v55_v18 }
  0x93   :  { %1440 = vmatprep.subr.bf16.mxu1 %v3806_v2  ;;  %v5208_v21 = vmax.bf16 %v5778_v41, %v90_v48 }
  0x94   :  { %v734_v55 = vunpack.c.l.b16 %v718_v37  ;;  %v1569_v37 = vunpack.c.l.bf16 %v5099_v10  ;;  %v5783_v10 = vunpack.c.l.bf16 %v5160_v36 }
  0x96   :  { %v741_v16 = vsel %vm362_vm8, %v734_v55, %v740_v7  ;;  %v1571_v7 = vunpack.c.l.bf16 %v5102_v47  ;;  %v5119_v55 = vmax.bf16 %v5778_v41, %v96_v8 }
  0x97   :  { %v742_v24 = vpack.c.b16 %v741_v16, %v741_v16  ;;  %v1581_v16 = vsel %vm199_vm1, %v1563_v61, 0.0 }
  0x99   :  { %3725 = vmatmul.mubr.msk.bf16.vlgmr.msra.gmra.mxu0 %vm377_vm9, %v742_v24  ;;  %v1593_v24 = vsel %vm199_vm1, %v1565_v33, 0.0 }
  0x9a   :  { %1078 = vmatpush1.bf16.msra.mxu0 %v3753_v35  ;;  %1109 = vmatprep.mubr.bf16.mxu0 %v5778_v41  ;;  %v5647_v35 = vunpack.c.l.bf16 %v5105_v9 }
  0x9b   :  { %1079 = vmatprep.subr.bf16.mxu0 %v3761_v14  ;;  %v5646_v14 = vunpack.c.l.bf16 %v5111_v52 }
  0x9d   :  { %v1653_v5 = vsel %vm199_vm1, %v5646_v14, 0.0 }
  0x9e   :  { %1080 = vmatpush1.bf16.msra.mxu0 %v3759_v29  ;;  %v1605_v29 = vsel %vm199_vm1, %v1567_v1, 0.0 }
  0x9f   :  { %1081 = vmatprep.subr.bf16.mxu0 %v3767_v62  ;;  %v1617_v62 = vsel %vm199_vm1, %v1569_v37, 0.0 }
  0xa2   :  { %1082 = vmatpush1.bf16.msra.mxu0 %v3765_v13  ;;  %v1629_v13 = vsel %vm199_vm1, %v1571_v7, 0.0 }
  0xa3   :  { %1083 = vmatprep.subr.bf16.mxu0 %v3773_v42  ;;  %v5643_v42 = vunpack.c.l.bf16 %v5119_v55 }
  0xa6   :  { %1084 = vmatpush1.bf16.msra.mxu0 %v3771_v43  ;;  %v1582_v43 = vadd.f32 %v1581_v16, %v4778_v26  ;;  %v62_v26 = vld [vmem:[%s5587_s0 + $0x50] sm:$0xf] }
  0xa7   :  { %1085 = vmatprep.subr.bf16.mxu0 %v3779_v46  ;;  %v1641_v46 = vsel %vm199_vm1, %v5647_v35, 0.0 }
  0xa8   :  { %v1642_v25 = vadd.f32 %v1641_v46, %v4817_v15  ;;  %v83_v15 = vld [vmem:[%s5587_s0 + $0xa4] sm:$0xf] }
  0xa9   :  { %v5195_v32 = vmax.bf16 %v5778_v41, %v83_v15 }
  0xaa   :  { %1086 = vmatpush1.bf16.msra.mxu0 %v3777_v63  ;;  %v1594_v63 = vadd.f32 %v1593_v24, %v4789_v31  ;;  %v1630_v31 = vadd.f32 %v1629_v13, %v4809_v44  ;;  %v1654_v44 = vadd.f32 %v1653_v5, %v4848_v30 }
  0xab   :  { %1087 = vmatprep.subr.bf16.mxu0 %v3785_v3  ;;  %v5157_v3 = vmax.bf16 %v5778_v41, %v48_v57  ;;  %v5644_v57 = vunpack.c.l.bf16 %v5208_v21 }
  0xad   :  { %v5782_v27 = vunpack.c.l.bf16 %v5157_v3 }
  0xae   :  { %1088 = vmatpush1.bf16.msra.mxu0 %v3783_v20  ;;  %v1606_v20 = vadd.f32 %v1605_v29, %v4792_v34  ;;  %v5642_v34 = vunpack.c.l.bf16 %v5157_v3  ;;  %v5212_v29 = vmax.bf16 %v5778_v41, %v97_v11 }
  0xaf   :  { %1089 = vmatprep.subr.bf16.mxu0 %v3791_v49  ;;  %v1618_v49 = vadd.f32 %v1617_v62, %v4806_v54  ;;  %v5641_v54 = vunpack.c.l.bf16 %v5160_v36  ;;  %v5645_v62 = vunpack.c.l.bf16 %v5195_v32 }
  0xb0   :  { %v1583_v17 = vsel %vm199_vm1, %v5642_v34, 0.0 }
  0xb1   :  { %v1595_v60 = vsel %vm199_vm1, %v5641_v54, 0.0  ;;  %v1584_v16 = vadd.f32 %v1583_v17, %v1582_v43  ;;  %v5648_v43 = vunpack.c.l.bf16 %v5212_v29 }
  0xb2   :  { %1090 = vmatpush1.bf16.msra.mxu0 %v3789_v51  ;;  %v69_v51 = vld [vmem:[%s5587_s0 + $0x6c] sm:$0xf]  ;;  %v1596_v24 = vadd.f32 %v1595_v60, %v1594_v63 }
  0xb3   :  { %1091 = vmatprep.subr.bf16.mxu0 %v3797_v53  ;;  %v5169_v53 = vmax.bf16 %v5778_v41, %v62_v26  ;;  %v5176_v28 = vmax.bf16 %v5778_v41, %v69_v51  ;;  %v1585_v18 = vrot.slane %v1584_v16, 4 }
  0xb4   :  { %v1597_v5 = vrot.slane %v1596_v24, 4 }
  0xb5   :  { %v5639_v45 = vunpack.c.l.bf16 %v5169_v53  ;;  %v5638_v30 = vunpack.c.l.bf16 %v5176_v28  ;;  %v1586_v15 = vadd.f32 %v1585_v18, %v1584_v16  ;;  %v1667_v16 = vsel %vm199_vm1, %v5648_v43, 0.0 }
  0xb6   :  { %1092 = vmatpush1.bf16.msra.mxu0 %v3795_v6  ;;  %v76_v6 = vld [vmem:[%s5587_s0 + $0x88] sm:$0xf]  ;;  %v1598_v48 = vadd.f32 %v1597_v5, %v1596_v24 }
  0xb7   :  { %1159 = vmatprep.subr.bf16.mxu0 %v3803_v39  ;;  %v1665_v39 = vsel %vm199_vm1, %v5643_v42, 0.0  ;;  %v5188_v2 = vmax.bf16 %v5778_v41, %v76_v6  ;;  %v1607_v13 = vsel %vm199_vm1, %v5639_v45, 0.0  ;;  %v1619_v46 = vsel %vm199_vm1, %v5638_v30, 0.0 }
  0xb8   :  { %v1608_v26 = vadd.f32 %v1607_v13, %v1606_v20  ;;  %v1620_v63 = vadd.f32 %v1619_v46, %v1618_v49  ;;  %v1643_v6 = vsel %vm199_vm1, %v5645_v62, 0.0  ;;  %v1666_v11 = vadd.f32 %v1665_v39, %v4864_v58 }
  0xb9   :  { %v5640_v8 = vunpack.c.l.bf16 %v5188_v2  ;;  %v1644_v45 = vadd.f32 %v1643_v6, %v1642_v25  ;;  %v1655_v20 = vsel %vm199_vm1, %v5644_v57, 0.0  ;;  %v1587_v49 = vrot.slane %v1586_v15, 2 }
  0xba   :  { %v1609_v17 = vrot.slane %v1608_v26, 4  ;;  %v1621_v30 = vrot.slane %v1620_v63, 4  ;;  %v1599_v13 = vrot.slane %v1598_v48, 2  ;;  %v1656_v42 = vadd.f32 %v1655_v20, %v1654_v44 }
  0xbb   :  { %v1631_v51 = vsel %vm199_vm1, %v5640_v8, 0.0  ;;  %v1645_v34 = vrot.slane %v1644_v45, 4 }
  0xbc   :  { %v1632_v60 = vadd.f32 %v1631_v51, %v1630_v31  ;;  %v1610_v46 = vadd.f32 %v1609_v17, %v1608_v26  ;;  %v1622_v54 = vadd.f32 %v1621_v30, %v1620_v63  ;;  %v1588_v31 = vadd.f32 %v1587_v49, %v1586_v15 }
  0xbd   :  { %v1600_v24 = vadd.f32 %v1599_v13, %v1598_v48  ;;  %v1646_v18 = vadd.f32 %v1645_v34, %v1644_v45  ;;  %v1657_v5 = vrot.slane %v1656_v42, 4  ;;  %v1668_v51 = vadd.f32 %v1667_v16, %v1666_v11 }
  0xbe   :  { %v1633_v8 = vrot.slane %v1632_v60, 4  ;;  %v1611_v58 = vrot.slane %v1610_v46, 2  ;;  %v1623_v25 = vrot.slane %v1622_v54, 2  ;;  %v1589_v6 = vrot.slane %v1588_v31, 1 }
  0xbf   :  { %v1601_v57 = vrot.slane %v1600_v24, 1  ;;  %v1647_v30 = vrot.slane %v1646_v18, 2  ;;  %v1658_v63 = vadd.f32 %v1657_v5, %v1656_v42  ;;  %v1669_v44 = vrot.slane %v1668_v51, 4 }
  0xc0   :  { %v1634_v39 = vadd.f32 %v1633_v8, %v1632_v60  ;;  %v1612_v62 = vadd.f32 %v1611_v58, %v1610_v46  ;;  %v1624_v17 = vadd.f32 %v1623_v25, %v1622_v54  ;;  %v1590_v20 = vadd.f32 %v1589_v6, %v1588_v31 }
  0xc1   :  { %v1602_v14 = vadd.f32 %v1601_v57, %v1600_v24  ;;  %v1648_v48 = vadd.f32 %v1647_v30, %v1646_v18  ;;  %v1659_v49 = vrot.slane %v1658_v63, 2  ;;  %v1670_v8 = vadd.f32 %v1669_v44, %v1668_v51 }
  0xc2   :  { %v1635_v26 = vrot.slane %v1634_v39, 2  ;;  %v1613_v35 = vrot.slane %v1612_v62, 1  ;;  %v1625_v15 = vrot.slane %v1624_v17, 1  ;;  %v1675_v45 = vpack.c.bf16 %v1590_v20, %v1590_v20 }
  0xc3   :  { %v1676_v11 = vpack.c.bf16 %v1602_v14, %v1602_v14  ;;  %v1649_v16 = vrot.slane %v1648_v48, 1  ;;  %v1660_v46 = vadd.f32 %v1659_v49, %v1658_v63  ;;  %v1671_v58 = vrot.slane %v1670_v8, 2 }
  0xc4   :  { %v1636_v43 = vadd.f32 %v1635_v26, %v1634_v39  ;;  %v1614_v60 = vadd.f32 %v1613_v35, %v1612_v62  ;;  %v1626_v13 = vadd.f32 %v1625_v15, %v1624_v17  ;;  %v1691_v42 = vunpack.c.l.b16 %v1675_v45 }
  0xc5   :  { %v1692_v5 = vunpack.c.l.b16 %v1676_v11  ;;  %v1650_v31 = vadd.f32 %v1649_v16, %v1648_v48  ;;  %v1661_v57 = vrot.slane %v1660_v46, 1  ;;  %v1672_v24 = vadd.f32 %v1671_v58, %v1670_v8  ;;  %v5250_v58 = vld [vmem:[%s5589_s2] ss:$0 sm:$0xff] }
  0xc6   :  { %v1637_v34 = vrot.slane %v1636_v43, 1  ;;  %v1677_v25 = vpack.c.bf16 %v1614_v60, %v1614_v60  ;;  %v1678_v39 = vpack.c.bf16 %v1626_v13, %v1626_v13 }
  0xc7   :  { %v1699_v35 = vsel %vm350_vm2, %v1692_v5, %v1691_v42  ;;  %v1662_v62 = vadd.f32 %v1661_v57, %v1660_v46  ;;  %v1673_v14 = vrot.slane %v1672_v24, 1  ;;  %v1680_v26 = vpack.c.bf16 %v1650_v31, %v1650_v31  ;;  %v3801_v57 = vld [vmem:[#allocation2 + $0x2e0] ss:$24 sps:$4 sm:$0xff]  }
  0xc8   :  { %v1638_v54 = vadd.f32 %v1637_v34, %v1636_v43  ;;  %v1693_v51 = vunpack.c.l.b16 %v1677_v25  ;;  %v1694_v30 = vunpack.c.l.b16 %v1678_v39 }
  0xc9   :  { %v1674_v44 = vadd.f32 %v1673_v14, %v1672_v24  ;;  %v1681_v20 = vpack.c.bf16 %v1662_v62, %v1662_v62  ;;  %v1696_v15 = vunpack.c.l.b16 %v1680_v26  ;;  %v3804_v24 = vld [vmem:[#allocation2 + $0x150] ss:$24 sps:$4 sm:$0xff]   ;;  %v3810_v14 = vld [vmem:[#allocation2 + $0x120] ss:$24 sps:$4 sm:$0xff]   ;;  %v3815_v26 = vld [vmem:[#allocation2 + $0x284] ss:$24 sps:$4 sm:$0xff]  }
  0xca   :  { %v1679_v18 = vpack.c.bf16 %v1638_v54, %v1638_v54  ;;  %v1700_v43 = vsel %vm352_vm3, %v1693_v51, %v1699_v35  ;;  %v3812_v51 = vld [vmem:[#allocation2 + $0x124] ss:$24 sps:$4 sm:$0xff]   ;;  %v3807_v62 = vld [vmem:[#allocation2 + $0x2b0] ss:$24 sps:$4 sm:$0xff]  }
  0xcb   :  { %v1701_v49 = vsel %vm354_vm4, %v1694_v30, %v1700_v43  ;;  %v1682_v8 = vpack.c.bf16 %v1674_v44, %v1674_v44  ;;  %v1697_v60 = vunpack.c.l.b16 %v1681_v20  ;;  %v3813_v30 = vld [vmem:[#allocation2 + $0x280] ss:$24 sps:$4 sm:$0xff]   ;;  %v3821_v43 = vld [vmem:[#allocation2 + $0x254] ss:$24 sps:$4 sm:$0xff]   ;;  %v3824_v44 = vld [vmem:[#allocation2 + $0xc4] ss:$24 sps:$4 sm:$0xff]  }
  0xcc   :  { %v1695_v63 = vunpack.c.l.b16 %v1679_v18  ;;  %v3809_v18 = vld [vmem:[#allocation2 + $0x2b4] ss:$24 sps:$4 sm:$0xff]   ;;  %v3819_v20 = vld [vmem:[#allocation2 + $0x250] ss:$24 sps:$4 sm:$0xff]  }
  0xcd   :  { %v1698_v13 = vunpack.c.l.b16 %v1682_v8  ;;  %v3825_v8 = vld [vmem:[#allocation2 + $0x220] ss:$24 sps:$4 sm:$0xff]  }
  0xce   :  { %v1702_v34 = vsel %vm356_vm5, %v1695_v63, %v1701_v49  ;;  %v3816_v63 = vld [vmem:[#allocation2 + $0xf0] ss:$24 sps:$4 sm:$0xff]   ;;  %v3830_v49 = vld [vmem:[#allocation2 + $0x94] ss:$24 sps:$4 sm:$0xff]  }
  0xcf   :  { %v1703_v11 = vsel %vm358_vm6, %v1696_v15, %v1702_v34  ;;  %v3822_v15 = vld [vmem:[#allocation2 + $0xc0] ss:$24 sps:$4 sm:$0xff]   ;;  %v3833_v34 = vld [vmem:[#allocation2 + $0x1f4] ss:$24 sps:$4 sm:$0xff]  }
  0xd0   :  { %v1704_v16 = vsel %vm360_vm7, %v1697_v60, %v1703_v11  ;;  %v3828_v60 = vld [vmem:[#allocation2 + $0x90] ss:$24 sps:$4 sm:$0xff]  }
  0xd1   :  { %v5245_v46 = vsel %vm362_vm8, %v1698_v13, %v1704_v16  ;;  %v3831_v11 = vld [vmem:[#allocation2 + $0x1f0] ss:$24 sps:$4 sm:$0xff]   ;;  %v3834_v13 = vld [vmem:[#allocation2 + $0x60] ss:$24 sps:$4 sm:$0xff]   ;;  %v3839_v16 = vld [vmem:[#allocation2 + $0x1c4] ss:$24 sps:$4 sm:$0xff]  }
 0x11b   :  { %v5236_v6 = vpop.f32.mrf.mxu0 }
 0x11d   :  { %v3718_v17 = vpop.f32.mrf.mxu0 }
 0x11e   :  { %v3818_v17 = vld [vmem:[#allocation2 + $0xf4] ss:$24 sps:$4 sm:$0xff]  }
 0x11f   :  { %v418_v48 = vpop.f32.mrf.mxu0 }
 0x120   :  { %v3827_v48 = vld [vmem:[#allocation2 + $0x224] ss:$24 sps:$4 sm:$0xff]  }
 0x121   :  { %v3719_v45 = vpop.f32.mrf.mxu0 }
 0x122   :  { %v3836_v45 = vld [vmem:[#allocation2 + $0x64] ss:$24 sps:$4 sm:$0xff]  }
 0x159   :  { %v780_v54 = vpop.f32.mrf.mxu0 }
 0x15a   :  { %v781_v25 = vadd.f32 %v5250_v58, %v780_v54  ;;  %v3842_v54 = vld [vmem:[#allocation2 + $0x34] ss:$24 sps:$4 sm:$0xff]  }
 0x15b   :  { %v3726_v42 = vpop.f32.mrf.mxu0 }
 0x15c   :  { %v786_v5 = vmax.f32 %v781_v25, 0.0  ;;  %v3837_v25 = vld [vmem:[#allocation2 + $0x1c0] ss:$24 sps:$4 sm:$0xff]   ;;  %v3840_v42 = vld [vmem:[#allocation2 + $0x30] ss:$24 sps:$4 sm:$0xff]  }
 0x15d   :  { %v783_v31 = vpop.f32.mrf.mxu0 }
 0x15e   :  { %v5253_v39 = vpack.c.bf16 %v786_v5, %v786_v5  ;;  %v416_v5 = vadd.f32 %v5250_v58, %v5236_v6  ;;  %v3845_v31 = vld [vmem:[#allocation2 + $0x194] ss:$24 sps:$4 sm:$0xff]  }
 0x15f   :  { %v3727_v35 = vpop.f32.mrf.mxu0  ;;  %v3857_v6 = vld [vmem:[#allocation2 + $0x12c] ss:$24 sps:$4 sm:$0xff]  }
 0x160   :  { %1110 = vmatmul.mubr.bf16.vlgmr.msra.gmra.mxu0 %v5253_v39  ;;  %1151 = vmatmul.mubr.bf16.vlgmr.msra.gmra.mxu1 %v5253_v39  ;;  %v3851_v35 = vld [vmem:[#allocation2 + $0x15c] ss:$24 sps:$4 sm:$0xff]  }
 0x161   :  { %1160 = vmatpush1.bf16.msra.mxu0 %v3801_v57  ;;  %1441 = vmatpush1.bf16.msra.mxu1 %v3804_v24  ;;  %v3848_v57 = vld [vmem:[#allocation2 + $0x4] ss:$24 sps:$4 sm:$0xff]   ;;  %v3843_v24 = vld [vmem:[#allocation2 + $0x190] ss:$24 sps:$4 sm:$0xff]  }
 0x162   :  { %1161 = vmatprep.subr.bf16.mxu0 %v3809_v18  ;;  %1442 = vmatprep.subr.bf16.mxu1 %v3812_v51  ;;  %v3846_v18 = vld [vmem:[#allocation2] ss:$24 sps:$4 sm:$0xff]   ;;  %v421_v51 = vmax.f32 %v416_v5, 0.0  ;;  %v3887_v5 = vld [vmem:[#allocation2 + $0x3c] ss:$24 sps:$4 sm:$0xff]  }
 0x163   :  { %1191 = vmatprep.mubr.bf16.mxu0 %v5778_v41  ;;  %1472 = vmatprep.mubr.bf16.mxu1 %v5778_v41 }
 0x165   :  { %1162 = vmatpush1.bf16.msra.mxu0 %v3807_v62  ;;  %1443 = vmatpush1.bf16.msra.mxu1 %v3810_v14  ;;  %v3854_v62 = vld [vmem:[#allocation2 + $0x164] ss:$24 sps:$4 sm:$0xff]   ;;  %v3849_v14 = vld [vmem:[#allocation2 + $0x158] ss:$24 sps:$4 sm:$0xff]  }
 0x166   :  { %1163 = vmatprep.subr.bf16.mxu0 %v3815_v26  ;;  %1444 = vmatprep.subr.bf16.mxu1 %v3818_v17  ;;  %v3852_v26 = vld [vmem:[#allocation2 + $0x160] ss:$24 sps:$4 sm:$0xff]   ;;  %v5261_v17 = vpack.c.bf16 %v421_v51, %v421_v51  ;;  %v3896_v51 = vld [vmem:[#allocation2 + $0x14] ss:$24 sps:$4 sm:$0xff]  }
 0x169   :  { %1164 = vmatpush1.bf16.msra.mxu0 %v3813_v30  ;;  %1445 = vmatpush1.bf16.msra.mxu1 %v3816_v63  ;;  %v3860_v30 = vld [vmem:[#allocation2 + $0x134] ss:$24 sps:$4 sm:$0xff]   ;;  %v3855_v63 = vld [vmem:[#allocation2 + $0x128] ss:$24 sps:$4 sm:$0xff]  }
 0x16a   :  { %1165 = vmatprep.subr.bf16.mxu0 %v3821_v43  ;;  %1446 = vmatprep.subr.bf16.mxu1 %v3824_v44  ;;  %v3858_v43 = vld [vmem:[#allocation2 + $0x130] ss:$24 sps:$4 sm:$0xff]   ;;  %v3863_v44 = vld [vmem:[#allocation2 + $0xfc] ss:$24 sps:$4 sm:$0xff]  }
 0x16d   :  { %1166 = vmatpush1.bf16.msra.mxu0 %v3819_v20  ;;  %1447 = vmatpush1.bf16.msra.mxu1 %v3822_v15  ;;  %v3866_v20 = vld [vmem:[#allocation2 + $0x104] ss:$24 sps:$4 sm:$0xff]   ;;  %v3861_v15 = vld [vmem:[#allocation2 + $0xf8] ss:$24 sps:$4 sm:$0xff]  }
 0x16e   :  { %1167 = vmatprep.subr.bf16.mxu0 %v3827_v48  ;;  %1448 = vmatprep.subr.bf16.mxu1 %v3830_v49  ;;  %v3864_v48 = vld [vmem:[#allocation2 + $0x100] ss:$24 sps:$4 sm:$0xff]   ;;  %v3872_v49 = vld [vmem:[#allocation2 + $0xd4] ss:$24 sps:$4 sm:$0xff]  }
 0x171   :  { %1168 = vmatpush1.bf16.msra.mxu0 %v3825_v8  ;;  %1449 = vmatpush1.bf16.msra.mxu1 %v3828_v60  ;;  %v3867_v8 = vld [vmem:[#allocation2 + $0xc8] ss:$24 sps:$4 sm:$0xff]  }
 0x172   :  { %1169 = vmatprep.subr.bf16.mxu0 %v3833_v34  ;;  %1450 = vmatprep.subr.bf16.mxu1 %v3836_v45  ;;  %v3870_v60 = vld [vmem:[#allocation2 + $0xd0] ss:$24 sps:$4 sm:$0xff]   ;;  %v3875_v34 = vld [vmem:[#allocation2 + $0x9c] ss:$24 sps:$4 sm:$0xff]  }
 0x173   :  { %v3878_v45 = vld [vmem:[#allocation2 + $0xa4] ss:$24 sps:$4 sm:$0xff]  }
 0x175   :  { %1170 = vmatpush1.bf16.msra.mxu0 %v3831_v11  ;;  %1451 = vmatpush1.bf16.msra.mxu1 %v3834_v13  ;;  %v3873_v11 = vld [vmem:[#allocation2 + $0x98] ss:$24 sps:$4 sm:$0xff]  }
 0x176   :  { %1171 = vmatprep.subr.bf16.mxu0 %v3839_v16  ;;  %1452 = vmatprep.subr.bf16.mxu1 %v3842_v54  ;;  %v3876_v13 = vld [vmem:[#allocation2 + $0xa0] ss:$24 sps:$4 sm:$0xff]   ;;  %v3881_v16 = vld [vmem:[#allocation2 + $0x6c] ss:$24 sps:$4 sm:$0xff]  }
 0x177   :  { %v3884_v54 = vld [vmem:[#allocation2 + $0x74] ss:$24 sps:$4 sm:$0xff]  }
 0x179   :  { %1172 = vmatpush1.bf16.msra.mxu0 %v3837_v25  ;;  %1453 = vmatpush1.bf16.msra.mxu1 %v3840_v42  ;;  %v3879_v25 = vld [vmem:[#allocation2 + $0x68] ss:$24 sps:$4 sm:$0xff]  }
 0x17a   :  { %1173 = vmatprep.subr.bf16.mxu0 %v3845_v31  ;;  %1454 = vmatprep.subr.bf16.mxu1 %v3848_v57  ;;  %v3882_v42 = vld [vmem:[#allocation2 + $0x70] ss:$24 sps:$4 sm:$0xff]   ;;  %v3890_v31 = vld [vmem:[#allocation2 + $0x44] ss:$24 sps:$4 sm:$0xff]  }
 0x17b   :  { %v3885_v57 = vld [vmem:[#allocation2 + $0x38] ss:$24 sps:$4 sm:$0xff]  }
 0x17d   :  { %1174 = vmatpush1.bf16.msra.mxu0 %v3843_v24  ;;  %1455 = vmatpush1.bf16.msra.mxu1 %v3846_v18  ;;  %v3888_v24 = vld [vmem:[#allocation2 + $0x40] ss:$24 sps:$4 sm:$0xff]   ;;  %v3893_v18 = vld [vmem:[#allocation2 + $0xc] ss:$24 sps:$4 sm:$0xff]  }
 0x17e   :  { %1481 = vmatprep.subr.bf16.mxu0 %v3851_v35  ;;  %1522 = vmatprep.subr.bf16.mxu1 %v3854_v62  ;;  %v3891_v35 = vld [vmem:[#allocation2 + $0x8] ss:$24 sps:$4 sm:$0xff]  }
 0x17f   :  { %v3894_v62 = vld [vmem:[#allocation2 + $0x10] ss:$24 sps:$4 sm:$0xff]  }
 0x180   :  { %1192 = vmatmul.mubr.bf16.vlgmr.msra.gmra.mxu0 %v5253_v39  ;;  %1473 = vmatmul.mubr.bf16.vlgmr.msra.gmra.mxu1 %v5261_v17  ;;  %v3869_v39 = vld [vmem:[#allocation2 + $0xcc] ss:$24 sps:$4 sm:$0xff]  }
 0x181   :  { %1482 = vmatpush1.bf16.msra.mxu0 %v3849_v14  ;;  %1523 = vmatpush1.bf16.msra.mxu1 %v3852_v26  ;;  %v5273_v14 = vld [vmem:[%s5588_s1 + $0x8] sm:$0xff]   ;;  %v1706_v26 = vpack.c.b16 %v5245_v46, %v5245_v46  ;;  %v3903_v46 = vld [vmem:[#allocation2 + $0x420] ss:$24 sps:$4 sm:$0xff]  }
 0x182   :  { %1483 = vmatprep.subr.bf16.mxu0 %v3857_v6  ;;  %1524 = vmatprep.subr.bf16.mxu1 %v3860_v30  ;;  %v3897_v6 = vld [vmem:[#allocation2 + $0x450] ss:$24 sps:$4 sm:$0xff]   ;;  %v3899_v30 = vld [vmem:[#allocation2 + $0x454] ss:$24 sps:$4 sm:$0xff]  }
 0x183   :  { %1513 = vmatprep.mubr.bf16.mxu0 %v5778_v41  ;;  %1554 = vmatprep.mubr.bf16.mxu1 %v5778_v41 }
 0x185   :  { %1484 = vmatpush1.bf16.msra.mxu0 %v3855_v63  ;;  %1525 = vmatpush1.bf16.msra.mxu1 %v3858_v43  ;;  %v3900_v63 = vld [vmem:[#allocation2 + $0x458] ss:$24 sps:$4 sm:$0xff]   ;;  %v3902_v43 = vld [vmem:[#allocation2 + $0x45c] ss:$24 sps:$4 sm:$0xff]  }
 0x186   :  { %1485 = vmatprep.subr.bf16.mxu0 %v3863_v44  ;;  %1526 = vmatprep.subr.bf16.mxu1 %v3866_v20  ;;  %v3905_v44 = vld [vmem:[#allocation2 + $0x424] ss:$24 sps:$4 sm:$0xff]  }
 0x187   :  { %v3908_v20 = vld [vmem:[#allocation2 + $0x42c] ss:$24 sps:$4 sm:$0xff]  }
 0x189   :  { %1486 = vmatpush1.bf16.msra.mxu0 %v3861_v15  ;;  %1527 = vmatpush1.bf16.msra.mxu1 %v3864_v48  ;;  %v3906_v15 = vld [vmem:[#allocation2 + $0x428] ss:$24 sps:$4 sm:$0xff]   ;;  %v3911_v48 = vld [vmem:[#allocation2 + $0x3f4] ss:$24 sps:$4 sm:$0xff]  }
 0x18a   :  { %1487 = vmatprep.subr.bf16.mxu0 %v3869_v39  ;;  %1528 = vmatprep.subr.bf16.mxu1 %v3872_v49  ;;  %v3914_v39 = vld [vmem:[#allocation2 + $0x3fc] ss:$24 sps:$4 sm:$0xff]   ;;  %v3909_v49 = vld [vmem:[#allocation2 + $0x3f0] ss:$24 sps:$4 sm:$0xff]  }
 0x18d   :  { %1488 = vmatpush1.bf16.msra.mxu0 %v3867_v8  ;;  %1529 = vmatpush1.bf16.msra.mxu1 %v3870_v60  ;;  %v3912_v8 = vld [vmem:[#allocation2 + $0x3f8] ss:$24 sps:$4 sm:$0xff]   ;;  %v3917_v60 = vld [vmem:[#allocation2 + $0x3c4] ss:$24 sps:$4 sm:$0xff]  }
 0x18e   :  { %1489 = vmatprep.subr.bf16.mxu0 %v3875_v34  ;;  %1530 = vmatprep.subr.bf16.mxu1 %v3878_v45  ;;  %v3920_v34 = vld [vmem:[#allocation2 + $0x3cc] ss:$24 sps:$4 sm:$0xff]   ;;  %v3915_v45 = vld [vmem:[#allocation2 + $0x3c0] ss:$24 sps:$4 sm:$0xff]  }
 0x191   :  { %1490 = vmatpush1.bf16.msra.mxu0 %v3873_v11  ;;  %1531 = vmatpush1.bf16.msra.mxu1 %v3876_v13  ;;  %v3918_v11 = vld [vmem:[#allocation2 + $0x3c8] ss:$24 sps:$4 sm:$0xff]   ;;  %v3923_v13 = vld [vmem:[#allocation2 + $0x394] ss:$24 sps:$4 sm:$0xff]  }
 0x192   :  { %1491 = vmatprep.subr.bf16.mxu0 %v3881_v16  ;;  %1532 = vmatprep.subr.bf16.mxu1 %v3884_v54  ;;  %v3926_v16 = vld [vmem:[#allocation2 + $0x39c] ss:$24 sps:$4 sm:$0xff]   ;;  %v3921_v54 = vld [vmem:[#allocation2 + $0x390] ss:$24 sps:$4 sm:$0xff]  }
 0x195   :  { %1492 = vmatpush1.bf16.msra.mxu0 %v3879_v25  ;;  %1533 = vmatpush1.bf16.msra.mxu1 %v3882_v42  ;;  %v2186_v25 = vrot.slane %v1563_v61, 2  ;;  %v2188_v42 = vrot.slane %v1565_v33, 2  ;;  %v5780_v61 = vunpack.c.l.bf16 %v5111_v52  ;;  %v5781_v33 = vunpack.c.l.bf16 %v5119_v55 }
 0x196   :  { %1493 = vmatprep.subr.bf16.mxu0 %v3887_v5  ;;  %1534 = vmatprep.subr.bf16.mxu1 %v3890_v31  ;;  %v3924_v5 = vld [vmem:[#allocation2 + $0x398] ss:$24 sps:$4 sm:$0xff]   ;;  %v2190_v31 = vrot.slane %v1567_v1, 2  ;;  %v2187_v1 = vrot.slane %v5782_v27, 2  ;;  %v3935_v27 = vld [vmem:[#allocation2 + $0x334] ss:$24 sps:$4 sm:$0xff]  }
 0x197   :  { %v2198_v4 = vrot.slane %v5780_v61, 2  ;;  %v2220_v47 = vsel %vm199_vm1, %v2186_v25, 0.0 }
 0x199   :  { %1494 = vmatpush1.bf16.msra.mxu0 %v3885_v57  ;;  %1535 = vmatpush1.bf16.msra.mxu1 %v3888_v24  ;;  %v2192_v57 = vrot.slane %v1569_v37, 2  ;;  %v2194_v24 = vrot.slane %v1571_v7, 2  ;;  %v2189_v37 = vrot.slane %v5783_v10, 2  ;;  %v5784_v7 = vunpack.c.l.bf16 %v5169_v53 }
 0x19a   :  { %1495 = vmatprep.subr.bf16.mxu0 %v3893_v18  ;;  %1536 = vmatprep.subr.bf16.mxu1 %v3896_v51  ;;  %v5779_v18 = vunpack.c.l.bf16 %v5105_v9  ;;  %v5306_v51 = vrot.slane %v5781_v33, 2  ;;  %v2232_v9 = vsel %vm199_vm1, %v2188_v42, 0.0 }
 0x19b   :  { %v2191_v52 = vrot.slane %v5784_v7, 2  ;;  %v2233_v55 = vadd.f32 %v2232_v9, %v5032_v59  ;;  %v2234_v36 = vsel %vm199_vm1, %v2189_v37, 0.0  ;;  %v5787_v59 = vunpack.c.l.bf16 %v5195_v32 }
 0x19c   :  { %v2196_v19 = vrot.slane %v5779_v18, 2  ;;  %v2268_v32 = vsel %vm199_vm1, %v2194_v24, 0.0 }
 0x19d   :  { %1496 = vmatpush1.bf16.msra.mxu0 %v3891_v35  ;;  %1537 = vmatpush1.bf16.msra.mxu1 %v3894_v62  ;;  %v2221_v35 = vadd.f32 %v2220_v47, %v5027_v56  ;;  %v2244_v62 = vsel %vm199_vm1, %v2190_v31, 0.0  ;;  %v2246_v56 = vsel %vm199_vm1, %v2191_v52, 0.0  ;;  %v2269_v42 = vadd.f32 %v2268_v32, %v5050_v38  ;;  %v3938_v47 = vld [vmem:[#allocation2 + $0x33c] ss:$24 sps:$4 sm:$0xff]  }
 0x19e   :  { %3728 = vmatprep.subr.bf16.mxu0 %v5741_v50  ;;  %2041 = vmatprep.subr.bf16.mxu1 %v3899_v30  ;;  %v2245_v30 = vadd.f32 %v2244_v62, %v5042_v12  ;;  %v2280_v31 = vsel %vm199_vm1, %v2196_v19, 0.0  ;;  %v3933_v19 = vld [vmem:[#allocation2 + $0x330] ss:$24 sps:$4 sm:$0xff]  }
 0x19f   :  { %v2281_v38 = vadd.f32 %v2280_v31, %v5055_v0 }
 0x1a0   :  { %1514 = vmatmul.mubr.bf16.vlgmr.msra.gmra.mxu0 %v5261_v17  ;;  %1555 = vmatmul.mubr.bf16.vlgmr.msra.gmra.mxu1 %v5261_v17  ;;  %v5285_v17 = vld [vmem:[%s5588_s1] sm:$0xff]  }
 0x1a1   :  { %3729 = vmatpush3.bf16.msra.mxu0 %v5273_v14  ;;  %3732 = vmatprep.mubr.msk.bf16.mxu0 %vm4139_vm0, %v5741_v50 }
 0x1a2   :  { %3730 = vmatprep.subr.bf16.mxu0 %v5741_v50  ;;  %2073 = vmatprep.mubr.bf16.mxu1 %v5778_v41 }
 0x1a3   :  { %2042 = vmatpush1.bf16.msra.mxu1 %v3897_v6  ;;  %v2222_v6 = vsel %vm199_vm1, %v2187_v1, 0.0 }
 0x1a4   :  { %2043 = vmatprep.subr.bf16.mxu1 %v3905_v44  ;;  %v2223_v53 = vadd.f32 %v2222_v6, %v2221_v35  ;;  %v2235_v44 = vadd.f32 %v2234_v36, %v2233_v55  ;;  %v3936_v35 = vld [vmem:[#allocation2 + $0x338] ss:$24 sps:$4 sm:$0xff]  }
 0x1a5   :  { %3731 = vmatpush3.bf16.msra.mxu0 %v5285_v17 }
 0x1a6   :  { %2082 = vmatprep.subr.bf16.mxu0 %v3902_v43  ;;  %v2236_v12 = vrot.slane %v2235_v44, 4 }
 0x1a7   :  { %2044 = vmatpush1.bf16.msra.mxu1 %v3903_v46  ;;  %v2247_v46 = vadd.f32 %v2246_v56, %v2245_v30  ;;  %v3941_v30 = vld [vmem:[#allocation2 + $0x304] ss:$24 sps:$4 sm:$0xff]   ;;  %v3939_v56 = vld [vmem:[#allocation2 + $0x300] ss:$24 sps:$4 sm:$0xff]  }
 0x1a8   :  { %3733 = vmatmul.mubr.msk.bf16.vlgmr.msra.gmra.mxu0 %vm377_vm9, %v1706_v26  ;;  %2045 = vmatprep.subr.bf16.mxu1 %v3911_v48  ;;  %v5785_v26 = vunpack.c.l.bf16 %v5176_v28  ;;  %v2256_v28 = vsel %vm199_vm1, %v2192_v57, 0.0  ;;  %v5788_v48 = vunpack.c.l.bf16 %v5208_v21  ;;  %v2237_v25 = vadd.f32 %v2236_v12, %v2235_v44 }
 0x1a9   :  { %2114 = vmatprep.mubr.bf16.mxu0 %v5778_v41  ;;  %2083 = vmatpush1.bf16.msra.mxu0 %v3900_v63  ;;  %v5786_v63 = vunpack.c.l.bf16 %v5188_v2  ;;  %v2257_v2 = vadd.f32 %v2256_v28, %v5045_v23  ;;  %v2292_v57 = vsel %vm199_vm1, %v2198_v4, 0.0 }
 0x1aa   :  { %2084 = vmatprep.subr.bf16.mxu0 %v3908_v20  ;;  %v2193_v3 = vrot.slane %v5785_v26, 2  ;;  %v2197_v20 = vrot.slane %v5787_v59, 2  ;;  %v2238_v18 = vrot.slane %v2237_v25, 2  ;;  %v2293_v10 = vadd.f32 %v2292_v57, %v5059_v22  ;;  %v3944_v59 = vld [vmem:[#allocation2 + $0x30c] ss:$24 sps:$4 sm:$0xff]  }
 0x1ab   :  { %2046 = vmatpush1.bf16.msra.mxu1 %v3909_v49  ;;  %v2195_v43 = vrot.slane %v5786_v63, 2  ;;  %v2224_v49 = vrot.slane %v2223_v53, 4 }
 0x1ac   :  { %2047 = vmatprep.subr.bf16.mxu1 %v3917_v60  ;;  %v5789_v60 = vunpack.c.l.bf16 %v5212_v29  ;;  %v2282_v29 = vsel %vm199_vm1, %v2197_v20, 0.0  ;;  %v2239_v7 = vadd.f32 %v2238_v18, %v2237_v25 }
 0x1ad   :  { %2085 = vmatpush1.bf16.msra.mxu0 %v3906_v15  ;;  %v2258_v15 = vsel %vm199_vm1, %v2193_v3, 0.0  ;;  %v2283_v62 = vadd.f32 %v2282_v29, %v2281_v38  ;;  %v2304_v3 = vsel %vm199_vm1, %v5306_v51, 0.0  ;;  %v3942_v51 = vld [vmem:[#allocation2 + $0x308] ss:$24 sps:$4 sm:$0xff]  }
 0x1ae   :  { %2086 = vmatprep.subr.bf16.mxu0 %v3914_v39  ;;  %v2199_v39 = vrot.slane %v5788_v48, 2  ;;  %v2259_v21 = vadd.f32 %v2258_v15, %v2257_v2  ;;  %v2240_v22 = vrot.slane %v2239_v7, 1  ;;  %v2305_v44 = vadd.f32 %v2304_v3, %v5061_v40 }
 0x1af   :  { %2048 = vmatpush1.bf16.msra.mxu1 %v3915_v45  ;;  %v2248_v45 = vrot.slane %v2247_v46, 4 }
 0x1b0   :  { %2049 = vmatprep.subr.bf16.mxu1 %v3923_v13  ;;  %v3927_v13 = vld [vmem:[#allocation2 + $0x360] ss:$24 sps:$4 sm:$0xff]   ;;  %v2260_v61 = vrot.slane %v2259_v21, 4  ;;  %v2294_v37 = vsel %vm199_vm1, %v2199_v39, 0.0 }
 0x1b1   :  { %2087 = vmatpush1.bf16.msra.mxu0 %v3912_v8  ;;  %v3929_v8 = vld [vmem:[#allocation2 + $0x364] ss:$24 sps:$4 sm:$0xff]   ;;  %v2249_v23 = vadd.f32 %v2248_v45, %v2247_v46  ;;  %v2295_v26 = vadd.f32 %v2294_v37, %v2293_v10  ;;  %v2241_v46 = vadd.f32 %v2240_v22, %v2239_v7 }
 0x1b2   :  { %2088 = vmatprep.subr.bf16.mxu0 %v3920_v34  ;;  %v5336_v34 = vrot.slane %v5789_v60, 2  ;;  %v2261_v4 = vadd.f32 %v2260_v61, %v2259_v21  ;;  %v3947_v45 = vld [vmem:[#allocation2 + $0x464] ss:$24 sps:$4 sm:$0xff]  }
 0x1b3   :  { %2050 = vmatpush1.bf16.msra.mxu1 %v3921_v54  ;;  %v2225_v54 = vadd.f32 %v2224_v49, %v2223_v53  ;;  %v2250_v1 = vrot.slane %v2249_v23, 2  ;;  %v2296_v53 = vrot.slane %v2295_v26, 4 }
 0x1b4   :  { %2051 = vmatprep.subr.bf16.mxu1 %v3929_v8  ;;  %v2262_v6 = vrot.slane %v2261_v4, 2  ;;  %v2306_v12 = vsel %vm199_vm1, %v5336_v34, 0.0 }
 0x1b5   :  { %2089 = vmatpush1.bf16.msra.mxu0 %v3918_v11  ;;  %v2270_v11 = vsel %vm199_vm1, %v2195_v43, 0.0  ;;  %v2226_v24 = vrot.slane %v2225_v54, 2  ;;  %v2251_v55 = vadd.f32 %v2250_v1, %v2249_v23  ;;  %v2284_v43 = vrot.slane %v2283_v62, 4 }
 0x1b6   :  { %2090 = vmatprep.subr.bf16.mxu0 %v3926_v16  ;;  %v3932_v16 = vld [vmem:[#allocation2 + $0x36c] ss:$24 sps:$4 sm:$0xff]   ;;  %v2271_v33 = vadd.f32 %v2270_v11, %v2269_v42  ;;  %v2263_v28 = vadd.f32 %v2262_v6, %v2261_v4  ;;  %v2297_v49 = vadd.f32 %v2296_v53, %v2295_v26  ;;  %v2307_v60 = vadd.f32 %v2306_v12, %v2305_v44 }
 0x1b7   :  { %2052 = vmatpush1.bf16.msra.mxu1 %v3927_v13  ;;  %v2227_v9 = vadd.f32 %v2226_v24, %v2225_v54  ;;  %v2252_v63 = vrot.slane %v2251_v55, 1  ;;  %v2285_v39 = vadd.f32 %v2284_v43, %v2283_v62  ;;  %v2315_v13 = vpack.c.bf16 %v2241_v46, %v2241_v46 }
 0x1b8   :  { %v2272_v52 = vrot.slane %v2271_v33, 4  ;;  %2053 = vmatprep.subr.bf16.mxu1 %v3935_v27  ;;  %v2264_v2 = vrot.slane %v2263_v28, 1  ;;  %v2298_v11 = vrot.slane %v2297_v49, 2  ;;  %v2308_v21 = vrot.slane %v2307_v60, 4 }
 0x1b9   :  { %2091 = vmatpush1.bf16.msra.mxu0 %v3924_v5  ;;  %v3930_v5 = vld [vmem:[#allocation2 + $0x368] ss:$24 sps:$4 sm:$0xff]   ;;  %v2228_v0 = vrot.slane %v2227_v9, 1  ;;  %v2253_v48 = vadd.f32 %v2252_v63, %v2251_v55  ;;  %v2286_v32 = vrot.slane %v2285_v39, 2  ;;  %v2331_v23 = vunpack.c.l.b16 %v2315_v13 }
 0x1ba   :  { %2092 = vmatprep.subr.bf16.mxu0 %v3932_v16  ;;  %v2273_v36 = vadd.f32 %v2272_v52, %v2271_v33  ;;  %v2265_v54 = vadd.f32 %v2264_v2, %v2263_v28  ;;  %v2309_v57 = vadd.f32 %v2308_v21, %v2307_v60 }
 0x1bb   :  { %2054 = vmatpush1.bf16.msra.mxu1 %v3933_v19  ;;  %v2229_v20 = vadd.f32 %v2228_v0, %v2227_v9  ;;  %v2316_v16 = vpack.c.bf16 %v2253_v48, %v2253_v48  ;;  %v2287_v34 = vadd.f32 %v2286_v32, %v2285_v39 }
 0x1bc   :  { %v2274_v15 = vrot.slane %v2273_v36, 2  ;;  %2055 = vmatprep.subr.bf16.mxu1 %v3941_v30  ;;  %v2317_v24 = vpack.c.bf16 %v2265_v54, %v2265_v54  ;;  %v2310_v27 = vrot.slane %v2309_v57, 2 }
 0x1bd   :  { %2093 = vmatpush1.bf16.msra.mxu0 %v3930_v5  ;;  %v2314_v40 = vpack.c.bf16 %v2229_v20, %v2229_v20  ;;  %v2299_v5 = vadd.f32 %v2298_v11, %v2297_v49  ;;  %v2332_v31 = vunpack.c.l.b16 %v2316_v16  ;;  %v2288_v18 = vrot.slane %v2287_v34, 1 }
 0x1be   :  { %2094 = vmatprep.subr.bf16.mxu0 %v3938_v47  ;;  %v2275_v8 = vadd.f32 %v2274_v15, %v2273_v36  ;;  %v2333_v38 = vunpack.c.l.b16 %v2317_v24  ;;  %v2311_v47 = vadd.f32 %v2310_v27, %v2309_v57 }
 0x1bf   :  { %2056 = vmatpush1.bf16.msra.mxu1 %v3939_v56  ;;  %v2330_v42 = vunpack.c.l.b16 %v2314_v40  ;;  %v2300_v61 = vrot.slane %v2299_v5, 1  ;;  %v2289_v37 = vadd.f32 %v2288_v18, %v2287_v34  ;;  %v3945_v18 = vld [vmem:[#allocation2 + $0x460] ss:$24 sps:$4 sm:$0xff]  }
 0x1c0   :  { %v2276_v25 = vrot.slane %v2275_v8, 1  ;;  %2123 = vmatprep.subr.bf16.mxu1 %v3947_v45 }
 0x1c1   :  { %2095 = vmatpush1.bf16.msra.mxu0 %v3936_v35  ;;  %v2338_v33 = vsel %vm350_vm2, %v2331_v23, %v2330_v42  ;;  %v2301_v19 = vadd.f32 %v2300_v61, %v2299_v5  ;;  %v2319_v4 = vpack.c.bf16 %v2289_v37, %v2289_v37  ;;  %v2312_v35 = vrot.slane %v2311_v47, 1 }
 0x1c2   :  { %2096 = vmatprep.subr.bf16.mxu0 %v3944_v59  ;;  %v2277_v29 = vadd.f32 %v2276_v25, %v2275_v8  ;;  %v2339_v10 = vsel %vm352_vm3, %v2332_v31, %v2338_v33  ;;  %v3950_v33 = vld [vmem:[#allocation2 + $0x434] ss:$24 sps:$4 sm:$0xff]  }
 0x1c3   :  { %v2340_v7 = vsel %vm354_vm4, %v2333_v38, %v2339_v10  ;;  %v2320_v52 = vpack.c.bf16 %v2301_v19, %v2301_v19  ;;  %v2335_v62 = vunpack.c.l.b16 %v2319_v4  ;;  %v2313_v3 = vadd.f32 %v2312_v35, %v2311_v47  ;;  %v3953_v38 = vld [vmem:[#allocation2 + $0x404] ss:$24 sps:$4 sm:$0xff]   ;;  %v3971_v10 = vld [vmem:[#allocation2 + $0x5d4] ss:$24 sps:$4 sm:$0xff]   ;;  %v3951_v19 = vld [vmem:[#allocation2 + $0x400] ss:$24 sps:$4 sm:$0xff]  }
 0x1c4   :  { %v2318_v1 = vpack.c.bf16 %v2277_v29, %v2277_v29  ;;  %v3969_v47 = vld [vmem:[#allocation2 + $0x5d0] ss:$24 sps:$4 sm:$0xff]   ;;  %v3975_v4 = vld [vmem:[#allocation2 + $0x5a0] ss:$24 sps:$4 sm:$0xff]  }
 0x1c5   :  { %2097 = vmatpush1.bf16.msra.mxu0 %v3942_v51  ;;  %v2336_v26 = vunpack.c.l.b16 %v2320_v52  ;;  %v2321_v22 = vpack.c.bf16 %v2313_v3, %v2313_v3  ;;  %v3983_v52 = vld [vmem:[#allocation2 + $0x574] ss:$24 sps:$4 sm:$0xff]   ;;  %v3981_v35 = vld [vmem:[#allocation2 + $0x570] ss:$24 sps:$4 sm:$0xff]   ;;  %v3987_v3 = vld [vmem:[#allocation2 + $0x540] ss:$24 sps:$4 sm:$0xff]  }
 0x1c6   :  { %3736 = vmatprep.subr.bf16.mxu0 %v5741_v50  ;;  %v2334_v9 = vunpack.c.l.b16 %v2318_v1  ;;  %v3948_v1 = vld [vmem:[#allocation2 + $0x430] ss:$24 sps:$4 sm:$0xff]  }
 0x1c7   :  { %v2337_v36 = vunpack.c.l.b16 %v2321_v22  ;;  %v3995_v22 = vld [vmem:[#allocation2 + $0x514] ss:$24 sps:$4 sm:$0xff]  }
 0x1c8   :  { %v2341_v55 = vsel %vm356_vm5, %v2334_v9, %v2340_v7  ;;  %v3956_v9 = vld [vmem:[#allocation2 + $0x3d4] ss:$24 sps:$4 sm:$0xff]   ;;  %v3954_v7 = vld [vmem:[#allocation2 + $0x3d0] ss:$24 sps:$4 sm:$0xff]  }
 0x1c9   :  { %v2342_v0 = vsel %vm358_vm6, %v2335_v62, %v2341_v55  ;;  %v3962_v55 = vld [vmem:[#allocation2 + $0x374] ss:$24 sps:$4 sm:$0xff]   ;;  %v3989_v62 = vld [vmem:[#allocation2 + $0x544] ss:$24 sps:$4 sm:$0xff]  }
 0x1ca   :  { %v2343_v6 = vsel %vm360_vm7, %v2336_v26, %v2342_v0  ;;  %v3960_v26 = vld [vmem:[#allocation2 + $0x370] ss:$24 sps:$4 sm:$0xff]   ;;  %v3965_v0 = vld [vmem:[#allocation2 + $0x344] ss:$24 sps:$4 sm:$0xff]  }
 0x1cb   :  { %v2344_v30 = vsel %vm362_vm8, %v2337_v36, %v2343_v6  ;;  %v3963_v6 = vld [vmem:[#allocation2 + $0x340] ss:$24 sps:$4 sm:$0xff]   ;;  %v3993_v36 = vld [vmem:[#allocation2 + $0x510] ss:$24 sps:$4 sm:$0xff]  }
 0x1cc   :  { %v2345_v37 = vpack.c.b16 %v2344_v30, %v2344_v30  ;;  %v3968_v30 = vld [vmem:[#allocation2 + $0x314] ss:$24 sps:$4 sm:$0xff]  }
 0x220   :  { %v1111_v63 = vpop.f32.mrf.mxu0  ;;  %v1152_v43 = vpop.f32.mrf.mxu1 }
 0x222   :  { %v1113_v53 = vpop.f32.mrf.mxu0  ;;  %v1154_v44 = vpop.f32.mrf.mxu1 }
 0x224   :  { %v1115_v56 = vpop.f32.mrf.mxu0  ;;  %v1156_v59 = vpop.f32.mrf.mxu1 }
 0x225   :  { %v3978_v56 = vld [vmem:[#allocation2 + $0x5a8] ss:$24 sps:$4 sm:$0xff]   ;;  %v3986_v59 = vld [vmem:[#allocation2 + $0x57c] ss:$24 sps:$4 sm:$0xff]  }
 0x226   :  { %v1116_v20 = vpop.f32.mrf.mxu0  ;;  %v1157_v46 = vpop.f32.mrf.mxu1 }
 0x227   :  { %v3984_v20 = vld [vmem:[#allocation2 + $0x578] ss:$24 sps:$4 sm:$0xff]   ;;  %v3992_v46 = vld [vmem:[#allocation2 + $0x54c] ss:$24 sps:$4 sm:$0xff]  }
 0x240   :  { %v1193_v28 = vpop.f32.mrf.mxu0  ;;  %v1474_v15 = vpop.f32.mrf.mxu1 }
 0x241   :  { %v5360_v51 = vadd.f32 %v1474_v15, %v1111_v63  ;;  %v3966_v63 = vld [vmem:[#allocation2 + $0x310] ss:$24 sps:$4 sm:$0xff]   ;;  %v3998_v15 = vld [vmem:[#allocation2 + $0x51c] ss:$24 sps:$4 sm:$0xff]  }
 0x242   :  { %v1195_v48 = vpop.f32.mrf.mxu0  ;;  %v1476_v39 = vpop.f32.mrf.mxu1 }
 0x243   :  { %v5362_v49 = vadd.f32 %v1476_v39, %v1113_v53  ;;  %v3972_v53 = vld [vmem:[#allocation2 + $0x5d8] ss:$24 sps:$4 sm:$0xff]   ;;  %v4001_v39 = vld [vmem:[#allocation2 + $0x4e4] ss:$24 sps:$4 sm:$0xff]  }
 0x244   :  { %v1197_v12 = vpop.f32.mrf.mxu0  ;;  %v1478_v2 = vpop.f32.mrf.mxu1 }
 0x245   :  { %v3999_v12 = vld [vmem:[#allocation2 + $0x4e0] ss:$24 sps:$4 sm:$0xff]   ;;  %v4004_v2 = vld [vmem:[#allocation2 + $0x4ec] ss:$24 sps:$4 sm:$0xff]  }
 0x246   :  { %v1198_v8 = vpop.f32.mrf.mxu0  ;;  %v1479_v60 = vpop.f32.mrf.mxu1 }
 0x247   :  { %v4002_v8 = vld [vmem:[#allocation2 + $0x4e8] ss:$24 sps:$4 sm:$0xff]   ;;  %v4007_v60 = vld [vmem:[#allocation2 + $0x4b4] ss:$24 sps:$4 sm:$0xff]  }
 0x260   :  { %v1515_v40 = vpop.f32.mrf.mxu0  ;;  %v1556_v45 = vpop.f32.mrf.mxu1 }
 0x261   :  { %v5364_v32 = vadd.f32 %v1515_v40, %v1152_v43  ;;  %v5366_v11 = vadd.f32 %v1556_v45, %v1193_v28  ;;  %v3974_v43 = vld [vmem:[#allocation2 + $0x5dc] ss:$24 sps:$4 sm:$0xff]   ;;  %v3990_v28 = vld [vmem:[#allocation2 + $0x548] ss:$24 sps:$4 sm:$0xff]   ;;  %v4008_v45 = vld [vmem:[#allocation2 + $0x4b8] ss:$24 sps:$4 sm:$0xff]  }
 0x262   :  { %v1517_v13 = vpop.f32.mrf.mxu0  ;;  %v1558_v16 = vpop.f32.mrf.mxu1  ;;  %v4005_v40 = vld [vmem:[#allocation2 + $0x4b0] ss:$24 sps:$4 sm:$0xff]  }
 0x263   :  { %v5368_v54 = vadd.f32 %v1517_v13, %v1154_v44  ;;  %v5370_v25 = vadd.f32 %v1558_v16, %v1195_v48  ;;  %v3980_v44 = vld [vmem:[#allocation2 + $0x5ac] ss:$24 sps:$4 sm:$0xff]   ;;  %v3996_v48 = vld [vmem:[#allocation2 + $0x518] ss:$24 sps:$4 sm:$0xff]   ;;  %v4010_v13 = vld [vmem:[#allocation2 + $0x4bc] ss:$24 sps:$4 sm:$0xff]  }
 0x264   :  { %v1519_v21 = vpop.f32.mrf.mxu0  ;;  %v1560_v42 = vpop.f32.mrf.mxu1  ;;  %v4013_v16 = vld [vmem:[#allocation2 + $0x484] ss:$24 sps:$4 sm:$0xff]  }
 0x265   :  { %v4011_v21 = vld [vmem:[#allocation2 + $0x480] ss:$24 sps:$4 sm:$0xff]   ;;  %v4016_v42 = vld [vmem:[#allocation2 + $0x48c] ss:$24 sps:$4 sm:$0xff]  }
 0x266   :  { %v1520_v34 = vpop.f32.mrf.mxu0  ;;  %v1561_v5 = vpop.f32.mrf.mxu1 }
 0x267   :  { %v4014_v34 = vld [vmem:[#allocation2 + $0x488] ss:$24 sps:$4 sm:$0xff]   ;;  %v4019_v5 = vld [vmem:[#allocation2 + $0x5e4] ss:$24 sps:$4 sm:$0xff]  }
 0x268   :  { %v1744_v23 = vpop.f32.mrf.mxu0 }
 0x269   :  { %v1745_v31 = vadd.f32 %v5250_v58, %v1744_v23  ;;  %v4041_v23 = vld [vmem:[%s5592_s5 + $0x78] sm:$0xff]  }
 0x26a   :  { %v3734_v29 = vpop.f32.mrf.mxu0 }
 0x26b   :  { %v1750_v57 = vmax.f32 %v1745_v31, 0.0 }
 0x26c   :  { %v1747_v24 = vpop.f32.mrf.mxu0 }
 0x26d   :  { %v5373_v61 = vpack.c.bf16 %v1750_v57, %v1750_v57 }
 0x26e   :  { %v3735_v27 = vpop.f32.mrf.mxu0 }
 0x26f   :  { %2074 = vmatmul.mubr.bf16.vlgmr.msra.gmra.mxu1 %v5373_v61  ;;  %2115 = vmatmul.mubr.bf16.vlgmr.msra.gmra.mxu0 %v5373_v61 }
 0x270   :  { %2124 = vmatpush1.bf16.msra.mxu1 %v3945_v18  ;;  %3737 = vmatpush3.bf16.msra.mxu0 %v5273_v14  ;;  %v3977_v14 = vld [vmem:[#allocation2 + $0x5a4] ss:$24 sps:$4 sm:$0xff]  }
 0x271   :  { %2125 = vmatprep.subr.bf16.mxu1 %v3950_v33  ;;  %3738 = vmatprep.subr.bf16.mxu0 %v5741_v50 }
 0x272   :  { %3740 = vmatprep.mubr.msk.bf16.mxu0 %vm4139_vm0, %v5741_v50  ;;  %2155 = vmatprep.mubr.bf16.mxu1 %v5778_v41  ;;  %v3959_v50 = vld [vmem:[#allocation2 + $0x3a4] ss:$24 sps:$4 sm:$0xff]  }
 0x274   :  { %2126 = vmatpush1.bf16.msra.mxu1 %v3948_v1  ;;  %3739 = vmatpush3.bf16.msra.mxu0 %v5285_v17  ;;  %v3957_v17 = vld [vmem:[#allocation2 + $0x3a0] ss:$24 sps:$4 sm:$0xff]  }
 0x275   :  { %2127 = vmatprep.subr.bf16.mxu1 %v3953_v38  ;;  %2680 = vmatprep.subr.bf16.mxu0 %v3971_v10 }
 0x277   :  { %3741 = vmatmul.mubr.msk.bf16.vlgmr.msra.gmra.mxu0 %vm377_vm9, %v2345_v37 }
 0x278   :  { %2128 = vmatpush1.bf16.msra.mxu1 %v3951_v19  ;;  %2681 = vmatpush1.bf16.msra.mxu0 %v3969_v47 }
 0x279   :  { %2129 = vmatprep.subr.bf16.mxu1 %v3956_v9  ;;  %2682 = vmatprep.subr.bf16.mxu0 %v3977_v14 }
 0x27a   :  { %2712 = vmatprep.mubr.bf16.mxu0 %v5778_v41 }
 0x27c   :  { %2130 = vmatpush1.bf16.msra.mxu1 %v3954_v7  ;;  %2683 = vmatpush1.bf16.msra.mxu0 %v3975_v4  ;;  %v4022_v4 = vld [vmem:[#allocation2 + $0x5b4] ss:$24 sps:$4 sm:$0xff]  }
 0x27d   :  { %2131 = vmatprep.subr.bf16.mxu1 %v3959_v50  ;;  %2684 = vmatprep.subr.bf16.mxu0 %v3983_v52  ;;  %v4045_v50 = vld [vmem:[%s5592_s5 + $0x70] sm:$0xff]   ;;  %v4025_v52 = vld [vmem:[#allocation2 + $0x584] ss:$24 sps:$4 sm:$0xff]  }
 0x280   :  { %2132 = vmatpush1.bf16.msra.mxu1 %v3957_v17  ;;  %2685 = vmatpush1.bf16.msra.mxu0 %v3981_v35  ;;  %v4046_v17 = vld [vmem:[%s5592_s5 + $0x30] sm:$0xff]   ;;  %v4049_v35 = vld [vmem:[%s5592_s5 + $0x68] sm:$0xff]  }
 0x281   :  { %2133 = vmatprep.subr.bf16.mxu1 %v3962_v55  ;;  %2686 = vmatprep.subr.bf16.mxu0 %v3989_v62  ;;  %v4023_v55 = vld [vmem:[#allocation2 + $0x580] ss:$24 sps:$4 sm:$0xff]   ;;  %v4028_v62 = vld [vmem:[#allocation2 + $0x554] ss:$24 sps:$4 sm:$0xff]  }
 0x284   :  { %2134 = vmatpush1.bf16.msra.mxu1 %v3960_v26  ;;  %2687 = vmatpush1.bf16.msra.mxu0 %v3987_v3  ;;  %v4053_v26 = vld [vmem:[%s5592_s5 + $0x60] sm:$0xff]   ;;  %v4026_v3 = vld [vmem:[#allocation2 + $0x550] ss:$24 sps:$4 sm:$0xff]  }
 0x285   :  { %2135 = vmatprep.subr.bf16.mxu1 %v3965_v0  ;;  %2688 = vmatprep.subr.bf16.mxu0 %v3995_v22  ;;  %v4031_v0 = vld [vmem:[#allocation2 + $0x524] ss:$24 sps:$4 sm:$0xff]  }
 0x286   :  { %v4054_v22 = vld [vmem:[%s5592_s5 + $0x20] sm:$0xff]  }
 0x288   :  { %2136 = vmatpush1.bf16.msra.mxu1 %v3963_v6  ;;  %2689 = vmatpush1.bf16.msra.mxu0 %v3993_v36  ;;  %v4057_v6 = vld [vmem:[%s5592_s5 + $0x58] sm:$0xff]  }
 0x289   :  { %2137 = vmatprep.subr.bf16.mxu1 %v3968_v30  ;;  %2690 = vmatprep.subr.bf16.mxu0 %v4001_v39  ;;  %v4029_v36 = vld [vmem:[#allocation2 + $0x520] ss:$24 sps:$4 sm:$0xff]   ;;  %v4034_v30 = vld [vmem:[#allocation2 + $0x4f4] ss:$24 sps:$4 sm:$0xff]  }
 0x28c   :  { %2138 = vmatpush1.bf16.msra.mxu1 %v3966_v63  ;;  %2691 = vmatpush1.bf16.msra.mxu0 %v3999_v12  ;;  %v4058_v63 = vld [vmem:[%s5592_s5 + $0x18] sm:$0xff]   ;;  %v4038_v12 = vld [vmem:[#allocation2 + $0x490] ss:$24 sps:$4 sm:$0xff]  }
 0x28d   :  { %2721 = vmatprep.subr.bf16.mxu1 %v3974_v43  ;;  %2692 = vmatprep.subr.bf16.mxu0 %v4007_v60  ;;  %v4061_v43 = vld [vmem:[%s5592_s5 + $0x50] sm:$0xff]   ;;  %v4051_v60 = vld [vmem:[%s5592_s5 + $0xe8] sm:$0xff]  }
 0x28f   :  { %2156 = vmatmul.mubr.bf16.vlgmr.msra.gmra.mxu1 %v5373_v61 }
 0x290   :  { %2722 = vmatpush1.bf16.msra.mxu1 %v3972_v53  ;;  %2753 = vmatprep.mubr.bf16.mxu1 %v5778_v41 }
 0x291   :  { %2723 = vmatprep.subr.bf16.mxu1 %v3980_v44  ;;  %2693 = vmatpush1.bf16.msra.mxu0 %v4005_v40  ;;  %v4032_v44 = vld [vmem:[#allocation2 + $0x4f0] ss:$24 sps:$4 sm:$0xff]  }
 0x292   :  { %2694 = vmatprep.subr.bf16.mxu0 %v4013_v16  ;;  %v4052_v40 = vld [vmem:[%s5592_s5 + $0xa8] sm:$0xff]   ;;  %v4059_v16 = vld [vmem:[%s5592_s5 + $0xd8] sm:$0xff]  }
 0x294   :  { %2724 = vmatpush1.bf16.msra.mxu1 %v3978_v56 }
 0x295   :  { %2725 = vmatprep.subr.bf16.mxu1 %v3986_v59  ;;  %2695 = vmatpush1.bf16.msra.mxu0 %v4011_v21  ;;  %v4037_v59 = vld [vmem:[#allocation2 + $0x4c4] ss:$24 sps:$4 sm:$0xff]  }
 0x296   :  { %2762 = vmatprep.subr.bf16.mxu0 %v4019_v5  ;;  %v4060_v21 = vld [vmem:[%s5592_s5 + $0x98] sm:$0xff]   ;;  %v4064_v5 = vld [vmem:[%s5592_s5 + $0x90] sm:$0xff]  }
 0x298   :  { %2726 = vmatpush1.bf16.msra.mxu1 %v3984_v20 }
 0x299   :  { %2727 = vmatprep.subr.bf16.mxu1 %v3992_v46 }
 0x29c   :  { %2728 = vmatpush1.bf16.msra.mxu1 %v3990_v28 }
 0x29d   :  { %2729 = vmatprep.subr.bf16.mxu1 %v3998_v15  ;;  %v4035_v15 = vld [vmem:[#allocation2 + $0x4c0] ss:$24 sps:$4 sm:$0xff]  }
 0x2a0   :  { %2730 = vmatpush1.bf16.msra.mxu1 %v3996_v48  ;;  %v4040_v48 = vld [vmem:[#allocation2 + $0x494] ss:$24 sps:$4 sm:$0xff]  }
 0x2a1   :  { %2731 = vmatprep.subr.bf16.mxu1 %v4004_v2  ;;  %v4044_v2 = vld [vmem:[%s5592_s5 + $0xb8] sm:$0xff]  }
 0x2a4   :  { %2732 = vmatpush1.bf16.msra.mxu1 %v4002_v8  ;;  %v4048_v8 = vld [vmem:[%s5592_s5 + $0xb0] sm:$0xff]  }
 0x2a5   :  { %2733 = vmatprep.subr.bf16.mxu1 %v4010_v13  ;;  %v4056_v13 = vld [vmem:[%s5592_s5 + $0xa0] sm:$0xff]  }
 0x2a8   :  { %2734 = vmatpush1.bf16.msra.mxu1 %v4008_v45  ;;  %v4055_v45 = vld [vmem:[%s5592_s5 + $0xe0] sm:$0xff]  }
 0x2a9   :  { %2735 = vmatprep.subr.bf16.mxu1 %v4016_v42  ;;  %v4062_v42 = vld [vmem:[%s5592_s5 + $0x10] sm:$0xff]  }
 0x2ac   :  { %2736 = vmatpush1.bf16.msra.mxu1 %v4014_v34  ;;  %v4063_v34 = vld [vmem:[%s5592_s5 + $0xd0] sm:$0xff]  }
 0x2ad   :  { %3646 = vmatprep.subr.bf16.mxu1 %v4041_v23  ;;  %v4065_v23 = vld [vmem:[%s5592_s5 + $0x48] sm:$0xff]  }
 0x32f   :  { %v2075_v31 = vpop.f32.mrf.mxu1  ;;  %v2116_v29 = vpop.f32.mrf.mxu0 }
 0x330   :  { %v5391_v57 = vadd.f32 %v2075_v31, %v5360_v51  ;;  %v5394_v24 = vadd.f32 %v2116_v29, %v5364_v32  ;;  %v4017_v32 = vld [vmem:[#allocation2 + $0x5e0] ss:$24 sps:$4 sm:$0xff]   ;;  %v4066_v31 = vld [vmem:[%s5592_s5 + $0x8] sm:$0xff]  }
 0x331   :  { %v2077_v18 = vpop.f32.mrf.mxu1  ;;  %v2118_v61 = vpop.f32.mrf.mxu0  ;;  %v4067_v29 = vld [vmem:[%s5592_s5 + $0xc8] sm:$0xff]  }
 0x332   :  { %v5397_v33 = vadd.f32 %v2077_v18, %v5362_v49  ;;  %v5400_v27 = vadd.f32 %v2118_v61, %v5368_v54  ;;  %v4042_v49 = vld [vmem:[%s5592_s5 + $0x38] sm:$0xff]   ;;  %v4068_v18 = vld [vmem:[%s5592_s5 + $0x88] sm:$0xff]   ;;  %v4069_v61 = vld [vmem:[%s5592_s5 + $0x40] sm:$0xff]  }
 0x333   :  { %v2079_v1 = vpop.f32.mrf.mxu1  ;;  %v2120_v38 = vpop.f32.mrf.mxu0 }
 0x334   :  { %v4070_v1 = vld [vmem:[%s5592_s5] sm:$0xff]  }
 0x335   :  { %v2080_v10 = vpop.f32.mrf.mxu1  ;;  %v2121_v37 = vpop.f32.mrf.mxu0  ;;  %v4071_v38 = vld [vmem:[%s5592_s5 + $0xc0] sm:$0xff]  }
 0x336   :  { %v4072_v10 = vld [vmem:[%s5592_s5 + $0x80] sm:$0xff]   ;;  %v4073_v37 = vld [vmem:[%s5592_s5 + $0x178] sm:$0xff]  }
 0x337   :  { %v2383_v19 = vpop.f32.mrf.mxu0 }
 0x338   :  { %v2384_v47 = vadd.f32 %v5250_v58, %v2383_v19  ;;  %v4020_v58 = vld [vmem:[#allocation2 + $0x5b0] ss:$24 sps:$4 sm:$0xff]   ;;  %v2811_v19 = vlaneseq }
 0x339   :  { %v3742_v51 = vpop.f32.mrf.mxu0 }
 0x33a   :  { %v2389_v9 = vmax.f32 %v2384_v47, 0.0  ;;  %v5511_v47 = vshrl.u32 %v2811_v19, 7 }
 0x33b   :  { %v2386_v14 = vpop.f32.mrf.mxu0 }
 0x33c   :  { %v5403_v7 = vpack.c.bf16 %v2389_v9, %v2389_v9  ;;  %v2813_v51 = vsub.s32 0, %v5511_v47  ;;  %v2821_v9 = vsub.s32 2, %v5511_v47  ;;  %v5518_v14 = vld [vmem:[%s5591_s4] sm:$0x3f] }
 0x33d   :  { %v3743_v54 = vpop.f32.mrf.mxu0 }
 0x33e   :  { %2713 = vmatmul.mubr.bf16.vlgmr.msra.gmra.mxu0 %v5403_v7  ;;  %2754 = vmatmul.mubr.bf16.vlgmr.msra.gmra.mxu1 %v5403_v7 }
 0x33f   :  { %2763 = vmatpush1.bf16.msra.mxu0 %v4017_v32  ;;  %2794 = vmatprep.mubr.bf16.mxu0 %v5778_v41  ;;  %v4050_v41 = vld [vmem:[%s5592_s5 + $0x28] sm:$0xff]   ;;  %v2817_v32 = vsub.s32 1, %v5511_v47 }
 0x340   :  { %2764 = vmatprep.subr.bf16.mxu0 %v4022_v4  ;;  %3647 = vmatpush3.bf16.msra.mxu1 %v4042_v49  ;;  %v2814_v4 = vrot.slane %v5518_v14, %v2813_v51  ;;  %v2822_v49 = vrot.slane %v5518_v14, %v2821_v9 }
 0x341   :  { %3648 = vmatprep.subr.bf16.mxu1 %v4045_v50 }
 0x343   :  { %2765 = vmatpush1.bf16.msra.mxu0 %v4020_v58 }
 0x344   :  { %2766 = vmatprep.subr.bf16.mxu0 %v4025_v52  ;;  %3649 = vmatpush3.bf16.msra.mxu1 %v4046_v17  ;;  %v2818_v17 = vrot.slane %v5518_v14, %v2817_v32 }
 0x345   :  { %3650 = vmatprep.subr.bf16.mxu1 %v4049_v35 }
 0x347   :  { %2767 = vmatpush1.bf16.msra.mxu0 %v4023_v55 }
 0x348   :  { %2768 = vmatprep.subr.bf16.mxu0 %v4028_v62  ;;  %3651 = vmatpush3.bf16.msra.mxu1 %v4050_v41 }
 0x349   :  { %3652 = vmatprep.subr.bf16.mxu1 %v4053_v26 }
 0x34b   :  { %2769 = vmatpush1.bf16.msra.mxu0 %v4026_v3 }
 0x34c   :  { %2770 = vmatprep.subr.bf16.mxu0 %v4031_v0  ;;  %3653 = vmatpush3.bf16.msra.mxu1 %v4054_v22 }
 0x34d   :  { %3654 = vmatprep.subr.bf16.mxu1 %v4057_v6 }
 0x34f   :  { %v2157_v53 = vpop.f32.mrf.mxu1  ;;  %2771 = vmatpush1.bf16.msra.mxu0 %v4029_v36 }
 0x350   :  { %v5439_v56 = vadd.f32 %v2157_v53, %v5366_v11  ;;  %2772 = vmatprep.subr.bf16.mxu0 %v4034_v30  ;;  %3655 = vmatpush3.bf16.msra.mxu1 %v4058_v63  ;;  %v4043_v11 = vld [vmem:[%s5592_s5 + $0xf8] sm:$0xff]  }
 0x351   :  { %v2159_v20 = vpop.f32.mrf.mxu1  ;;  %3656 = vmatprep.subr.bf16.mxu1 %v4061_v43 }
 0x352   :  { %v5442_v46 = vadd.f32 %v2159_v20, %v5370_v25  ;;  %v4047_v25 = vld [vmem:[%s5592_s5 + $0xf0] sm:$0xff]  }
 0x353   :  { %v2161_v28 = vpop.f32.mrf.mxu1  ;;  %2773 = vmatpush1.bf16.msra.mxu0 %v4032_v44 }
 0x354   :  { %2774 = vmatprep.subr.bf16.mxu0 %v4037_v59  ;;  %3657 = vmatpush3.bf16.msra.mxu1 %v4062_v42  ;;  %v4074_v28 = vld [vmem:[%s5592_s5 + $0x138] sm:$0xff]  }
 0x355   :  { %v2162_v39 = vpop.f32.mrf.mxu1  ;;  %3658 = vmatprep.subr.bf16.mxu1 %v4065_v23  ;;  %v4086_v23 = vld [vmem:[%s5592_s5 + $0x108] sm:$0xff]  }
 0x356   :  { %v4077_v39 = vld [vmem:[%s5592_s5 + $0x168] sm:$0xff]  }
 0x357   :  { %2775 = vmatpush1.bf16.msra.mxu0 %v4035_v15 }
 0x358   :  { %2776 = vmatprep.subr.bf16.mxu0 %v4040_v48  ;;  %3659 = vmatpush3.bf16.msra.mxu1 %v4066_v31  ;;  %v4076_v48 = vld [vmem:[%s5592_s5 + $0x130] sm:$0xff]  }
 0x359   :  { %3660 = vmatprep.subr.bf16.mxu1 %v4069_v61 }
 0x35b   :  { %2777 = vmatpush1.bf16.msra.mxu0 %v4038_v12  ;;  %v4078_v12 = vld [vmem:[%s5592_s5 + $0x128] sm:$0xff]  }
 0x35c   :  { %3668 = vmatprep.subr.bf16.mxu0 %v4043_v11  ;;  %3661 = vmatpush3.bf16.msra.mxu1 %v4070_v1  ;;  %v4079_v11 = vld [vmem:[%s5592_s5 + $0x160] sm:$0xff]  }
 0x35d   :  { %3690 = vmatprep.subr.bf16.mxu1 %v4073_v37 }
 0x35e   :  { %2795 = vmatmul.mubr.bf16.vlgmr.msra.gmra.mxu0 %v5403_v7  ;;  %v2825_v7 = vsub.s32 3, %v5511_v47 }
 0x35f   :  { %3669 = vmatpush3.bf16.msra.mxu0 %v4044_v2  ;;  %v4080_v2 = vld [vmem:[%s5592_s5 + $0x120] sm:$0xff]  }
 0x360   :  { %3670 = vmatprep.subr.bf16.mxu0 %v4047_v25  ;;  %v2826_v35 = vrot.slane %v5518_v14, %v2825_v7  ;;  %v4081_v25 = vld [vmem:[%s5592_s5 + $0x158] sm:$0xff]  }
 0x363   :  { %3671 = vmatpush3.bf16.msra.mxu0 %v4048_v8  ;;  %v4082_v8 = vld [vmem:[%s5592_s5 + $0x118] sm:$0xff]  }
 0x364   :  { %3672 = vmatprep.subr.bf16.mxu0 %v4051_v60  ;;  %v4083_v60 = vld [vmem:[%s5592_s5 + $0x150] sm:$0xff]  }
 0x367   :  { %3673 = vmatpush3.bf16.msra.mxu0 %v4052_v40  ;;  %v2829_v40 = vsub.s32 4, %v5511_v47 }
 0x368   :  { %3674 = vmatprep.subr.bf16.mxu0 %v4055_v45  ;;  %v4084_v45 = vld [vmem:[%s5592_s5 + $0x110] sm:$0xff]  }
 0x36b   :  { %3675 = vmatpush3.bf16.msra.mxu0 %v4056_v13  ;;  %v2833_v13 = vsub.s32 5, %v5511_v47 }
 0x36c   :  { %3676 = vmatprep.subr.bf16.mxu0 %v4059_v16  ;;  %v4085_v16 = vld [vmem:[%s5592_s5 + $0x148] sm:$0xff]  }
 0x36f   :  { %3677 = vmatpush3.bf16.msra.mxu0 %v4060_v21  ;;  %v2830_v21 = vrot.slane %v5518_v14, %v2829_v40 }
 0x370   :  { %3678 = vmatprep.subr.bf16.mxu0 %v4063_v34 }
 0x373   :  { %3679 = vmatpush3.bf16.msra.mxu0 %v4064_v5  ;;  %v2834_v5 = vrot.slane %v5518_v14, %v2833_v13 }
 0x374   :  { %3680 = vmatprep.subr.bf16.mxu0 %v4067_v29  ;;  %v4087_v29 = vld [vmem:[%s5592_s5 + $0x140] sm:$0xff]  }
 0x377   :  { %3681 = vmatpush3.bf16.msra.mxu0 %v4068_v18 }
 0x378   :  { %3682 = vmatprep.subr.bf16.mxu0 %v4071_v38 }
 0x37b   :  { %3683 = vmatpush3.bf16.msra.mxu0 %v4072_v10 }
 0x3fe   :  { %v2714_v54 = vpop.f32.mrf.mxu0  ;;  %v2755_v50 = vpop.f32.mrf.mxu1 }
 0x3ff   :  { %v2803_v58 = vadd.f32 %v2714_v54, %v5391_v57  ;;  %v2805_v52 = vadd.f32 %v2755_v50, %v5394_v24 }
 0x400   :  { %v2716_v55 = vpop.f32.mrf.mxu0  ;;  %v2757_v62 = vpop.f32.mrf.mxu1 }
 0x401   :  { %v2841_v41 = vadd.f32 %v2814_v4, %v2803_v58  ;;  %v2843_v26 = vadd.f32 %v2822_v49, %v2805_v52  ;;  %v2804_v3 = vadd.f32 %v2716_v55, %v5397_v33  ;;  %v2806_v0 = vadd.f32 %v2757_v62, %v5400_v27  ;;  %v4075_v27 = vld [vmem:[%s5592_s5 + $0x170] sm:$0xff]   ;;  %v3585_v58 = vld [vmem:[%s5593_s6] ss:$0 sm:$0xff] }
 0x402   :  { %v2718_v22 = vpop.f32.mrf.mxu0  ;;  %v2759_v6 = vpop.f32.mrf.mxu1 }
 0x403   :  { %v2842_v36 = vadd.f32 %v2818_v17, %v2804_v3  ;;  %v2844_v30 = vadd.f32 %v2826_v35, %v2806_v0  ;;  %v2847_v63 = vmax.f32 %v2841_v41, 0.0  ;;  %v2849_v57 = vmax.f32 %v2843_v26, 0.0 }
 0x404   :  { %v2719_v43 = vpop.f32.mrf.mxu0  ;;  %v2760_v24 = vpop.f32.mrf.mxu1 }
 0x405   :  { %v2848_v53 = vmax.f32 %v2842_v36, 0.0  ;;  %v2850_v44 = vmax.f32 %v2844_v30, 0.0  ;;  %v2853_v15 = vpack.c.bf16 %v2847_v63, %v2847_v63  ;;  %v2855_v33 = vpack.c.bf16 %v2849_v57, %v2849_v57 }
 0x407   :  { %v2854_v59 = vpack.c.bf16 %v2848_v53, %v2848_v53  ;;  %v2856_v20 = vpack.c.bf16 %v2850_v44, %v2850_v44 }
 0x409   :  { %3282 = vmatprep.mubr.bf16.mxu1 %v2854_v59  ;;  %3322 = vmatprep.mubr.bf16.mxu0 %v2856_v20 }
 0x40a   :  { %3283 = vmatmul.mubr.bf16.vlgmr.msra.gmra.mxu1 %v2853_v15  ;;  %3323 = vmatmul.mubr.bf16.vlgmr.msra.gmra.mxu0 %v2855_v33 }
 0x40b   :  { %3691 = vmatpush3.bf16.msra.mxu1 %v4074_v28 }
 0x40c   :  { %3692 = vmatprep.subr.bf16.mxu1 %v4075_v27 }
 0x40f   :  { %3693 = vmatpush3.bf16.msra.mxu1 %v4076_v48 }
 0x410   :  { %3694 = vmatprep.subr.bf16.mxu1 %v4077_v39 }
 0x413   :  { %3695 = vmatpush3.bf16.msra.mxu1 %v4078_v12 }
 0x414   :  { %3696 = vmatprep.subr.bf16.mxu1 %v4079_v11 }
 0x417   :  { %3697 = vmatpush3.bf16.msra.mxu1 %v4080_v2 }
 0x418   :  { %3698 = vmatprep.subr.bf16.mxu1 %v4081_v25 }
 0x41b   :  { %3699 = vmatpush3.bf16.msra.mxu1 %v4082_v8 }
 0x41c   :  { %3700 = vmatprep.subr.bf16.mxu1 %v4083_v60 }
 0x41e   :  { %v2796_v42 = vpop.f32.mrf.mxu0 }
 0x41f   :  { %v2807_v34 = vadd.f32 %v2796_v42, %v5439_v56  ;;  %3701 = vmatpush3.bf16.msra.mxu1 %v4084_v45  ;;  %v4088_v56 = vld [vmem:[%s5592_s5 + $0x100] sm:$0xff]  }
 0x420   :  { %v2798_v31 = vpop.f32.mrf.mxu0  ;;  %3702 = vmatprep.subr.bf16.mxu1 %v4085_v16 }
 0x421   :  { %v2845_v18 = vadd.f32 %v2830_v21, %v2807_v34  ;;  %v2808_v61 = vadd.f32 %v2798_v31, %v5442_v46 }
 0x422   :  { %v2800_v1 = vpop.f32.mrf.mxu0 }
 0x423   :  { %v2846_v38 = vadd.f32 %v2834_v5, %v2808_v61  ;;  %3703 = vmatpush3.bf16.msra.mxu1 %v4086_v23  ;;  %v2851_v10 = vmax.f32 %v2845_v18, 0.0 }
 0x424   :  { %v2801_v37 = vpop.f32.mrf.mxu0  ;;  %3704 = vmatprep.subr.bf16.mxu1 %v4087_v29 }
 0x425   :  { %v2852_v19 = vmax.f32 %v2846_v38, 0.0  ;;  %v2857_v51 = vpack.c.bf16 %v2851_v10, %v2851_v10 }
 0x427   :  { %v2858_v47 = vpack.c.bf16 %v2852_v19, %v2852_v19  ;;  %3705 = vmatpush3.bf16.msra.mxu1 %v4088_v56 }
 0x429   :  { %3362 = vmatprep.mubr.bf16.mxu1 %v2858_v47 }
 0x42a   :  { %3363 = vmatmul.mubr.bf16.vlgmr.msra.gmra.mxu1 %v2857_v51 }
 0x4ca   :  { %v3662_v9 = vpop.f32.mrf.mxu1  ;;  %v3684_v14 = vpop.f32.mrf.mxu0 }
 0x4cc   :  { %v3663_v32 = vpop.f32.mrf.mxu1  ;;  %v3685_v46 = vpop.f32.mrf.mxu0 }
 0x4cd   :  { %v3664_v50 = vadd.f32 %v3663_v32, %v3662_v9  ;;  %v3686_v35 = vadd.f32 %v3685_v46, %v3684_v14 }
 0x4ce   :  { %v3665_v7 = vpop.f32.mrf.mxu1  ;;  %v3687_v4 = vpop.f32.mrf.mxu0 }
 0x4cf   :  { %v3285_v52 = vadd.f32 %v3664_v50, %v3585_v58 }
 0x4d0   :  { %v3666_v49 = vpop.f32.mrf.mxu1  ;;  %v3688_v54 = vpop.f32.mrf.mxu0 }
 0x4d1   :  { %v3325_v62 = vadd.f32 %v3686_v35, %v3285_v52 }
 0x4ea   :  { %v3706_v17 = vpop.f32.mrf.mxu1 }
 0x4ec   :  { %v3707_v55 = vpop.f32.mrf.mxu1 }
 0x4ed   :  { %v3708_v41 = vadd.f32 %v3707_v55, %v3706_v17 }
 0x4ee   :  { %v3709_v26 = vpop.f32.mrf.mxu1 }
 0x4ef   :  { %v3365_v3 = vadd.f32 %v3708_v41, %v3325_v62 }
 0x4f0   :  { %v3710_v0 = vpop.f32.mrf.mxu1 }
 0x4f1   :  { %3370 = vst [vmem:[#allocation5] sm:$0xff] %v3365_v3 }
 0x4f2   :  { %4122 = shalt.err (!%p4119_p9)
}
 0x4f3   :  { %3380 = dma.vmem_to_hbm [thread:$0]  %s3378_s23, 128, %s5594_s7, [#allocation4]  }
 0x4f4   :  { %4133 = dma.done.wait [#allocation4], 128  }
 0x4f5   :  { %4134 = vsyncadd [#allocation4], 4294967168 }
 0x4f6   :  { %3384 = vsyncpa [#allocation3], 1 }
 0x4f7   :  { %3385 = vsyncpa [#allocation4], 1 }

</bundles_post_ra>
